<compile_context>
chip_gen: v7x
topology: tpu7x:2x2x1
jax: 0.10.0
libtpu: 0.0.40
codegen_flags: <defaults>
</compile_context>

<pallas_src>
import functools

import jax
import jax.numpy as jnp
from jax import lax
from jax.experimental import pallas as pl
from jax.experimental.pallas import tpu as pltpu

BN_EPS = 1e-5
LANE = 128


# ------------------------------ small helpers -------------------------------

def _round_up(x, m):
    return ((x + m - 1) // m) * m


def _pick_tile(total, cap, quantum=LANE):
    """Largest multiple of `quantum` <= cap that divides `total`."""
    best = quantum
    t = quantum
    while t <= min(cap, total):
        if total % t == 0:
            best = t
        t += quantum
    return best


def _vmem_limit_bytes():
    # ~3/4 of per-core VMEM: ~96 MiB on v5e/v6e (128 MiB), ~48 MiB on v7x (64 MiB).
    try:
        cap = pltpu.get_tpu_info().vmem_capacity_bytes
    except Exception:
        cap = 64 * 1024 * 1024
    return int(min(cap * 3 // 4, 100 * 1024 * 1024))


# ----------------------------- Pallas kernels --------------------------------

def matmul_bn_act_kernel(x_ref, w_ref, scale_ref, bias_ref, o_ref, acc_ref, *,
                         relu):
    """o = act((x @ w) * scale + bias); K-tiled, resident f32 accumulator.

    BN scale is applied to the f32 accumulator in the epilogue (not folded
    into the bf16 weights).
    """
    k = pl.program_id(2)

    @pl.when(k == 0)
    def _():
        acc_ref[...] = jnp.zeros_like(acc_ref)

    acc_ref[...] += jnp.dot(x_ref[...], w_ref[...],
                            preferred_element_type=jnp.float32)

    @pl.when(k == pl.num_programs(2) - 1)
    def _():
        y = acc_ref[...] * scale_ref[...] + bias_ref[...]
        if relu:
            y = jnp.maximum(y, 0.0)
        o_ref[...] = y.astype(o_ref.dtype)


def conv3x3_direct_kernel(*refs, L, Wp, relu, shortcut):
    """Direct 3x3 stride-1 'same' conv (+ optional fused 1x1 shortcut) + bias/ReLU.

    The padded image is flattened to [R, C] rows; for tap (di, dj) the rows
    needed for all output positions form ONE contiguous slice starting at
    di*Wp + dj (the last 2 columns of every output row are garbage and are
    sliced off outside the kernel).  Each tap is a (L, C) x (C, tn) MXU matmul
    accumulated in f32.
    """
    if shortcut:
        x_ref, w_ref, xs_ref, ws_ref, bias_ref, o_ref = refs
    else:
        x_ref, w_ref, bias_ref, o_ref = refs

    def tap(t):
        c0 = (t // 3) * Wp + (t % 3)
        return jnp.dot(x_ref[0, pl.ds(c0, L), :], w_ref[t],
                       preferred_element_type=jnp.float32)

    if shortcut:
        acc = jnp.dot(xs_ref[0], ws_ref[...], preferred_element_type=jnp.float32)
        start = 0
    else:
        acc = tap(0)
        start = 1
    for t in range(start, 9):
        acc = acc + tap(t)

    y = acc + bias_ref[...]
    if relu:
        y = jnp.maximum(y, 0.0)
    o_ref[0] = y.astype(o_ref.dtype)


# ------------------------------ Pallas wrappers -------------------------------

def matmul_bn_act(x2d, w2d, scale, bias, *, relu, out_dtype=jnp.bfloat16,
                  tm=1024, tn=512, tk=1024):
    """Tiled matmul + BN (scale/bias in f32 epilogue) + optional ReLU."""
    M, K = x2d.shape
    Kw, Nc = w2d.shape
    assert K == Kw
    Kp = _round_up(K, LANE)
    Np = _round_up(Nc, LANE)
    tn = _pick_tile(Np, tn)
    tk = _pick_tile(Kp, tk)
    tm = min(tm, _round_up(M, 16))
    Mp = _round_up(M, tm)

    xp = jnp.pad(x2d.astype(jnp.bfloat16), ((0, Mp - M), (0, Kp - K)))
    wp = jnp.pad(w2d.astype(jnp.bfloat16), ((0, Kp - K), (0, Np - Nc)))
    sp = jnp.pad(scale.astype(jnp.float32).reshape(1, Nc), ((0, 0), (0, Np - Nc)))
    bp = jnp.pad(bias.astype(jnp.float32).reshape(1, Nc), ((0, 0), (0, Np - Nc)))

    out = pl.pallas_call(
        functools.partial(matmul_bn_act_kernel, relu=relu),
        out_shape=jax.ShapeDtypeStruct((Mp, Np), out_dtype),
        grid=(Mp // tm, Np // tn, Kp // tk),
        in_specs=[
            pl.BlockSpec((tm, tk), lambda i, j, k: (i, k)),
            pl.BlockSpec((tk, tn), lambda i, j, k: (k, j)),
            pl.BlockSpec((1, tn), lambda i, j, k: (0, j)),
            pl.BlockSpec((1, tn), lambda i, j, k: (0, j)),
        ],
        out_specs=pl.BlockSpec((tm, tn), lambda i, j, k: (i, j)),
        scratch_shapes=[pltpu.VMEM((tm, tn), jnp.float32)],
        compiler_params=pltpu.CompilerParams(
            dimension_semantics=("parallel", "parallel", "arbitrary"),
            vmem_limit_bytes=_vmem_limit_bytes()),
    )(xp, wp, sp, bp)
    return out[:M, :Nc]


def conv3x3_bn_act_direct(x_nhwc, w_oihw, scale, bias, *, relu,
                          shortcut=None, out_dtype=jnp.bfloat16, tn_cap=512):
    """Fused 3x3 stride-1 pad-1 conv + BN (+ optional fused 1x1 shortcut conv +
    BN + residual add) + optional ReLU, without im2col.  Returns NHWC."""
    N, H, W, C = x_nhwc.shape
    c_out = w_oihw.shape[0]
    Hp, Wp = H + 2, W + 2
    Ho, Wo = H, W                        # stride 1, pad 1, kernel 3
    L = Ho * Wp                          # Wp columns computed/row; last 2 dropped
    R = _round_up(Hp * Wp + 2, 8)        # +2: (di=2,dj=2) tap over-reads 2 rows
    Np = _round_up(c_out, LANE)
    tn = _pick_tile(Np, tn_cap)

    # Flattened padded image [N, R, C] bf16 — one XLA pass (replaces 9x im2col).
    x_flat = jnp.pad(x_nhwc.astype(jnp.bfloat16),
                     ((0, 0), (1, 1), (1, 1), (0, 0))).reshape(N, Hp * Wp, C)
    x_flat = jnp.pad(x_flat, ((0, 0), (0, R - Hp * Wp), (0, 0)))

    # Per-tap weights [9, C_in, C_out], BN scale folded in f32, single bf16 cast.
    w9 = jnp.transpose(w_oihw, (2, 3, 1, 0)).reshape(9, C, c_out)
    w9 = w9.astype(jnp.float32) * scale.astype(jnp.float32)[None, None, :]
    w9 = jnp.pad(w9.astype(jnp.bfloat16), ((0, 0), (0, 0), (0, Np - c_out)))

    bias_total = bias.astype(jnp.float32)

    in_specs = [
        pl.BlockSpec((1, R, C), lambda n, j: (n, 0, 0)),
        pl.BlockSpec((9, C, tn), lambda n, j: (0, 0, j)),
    ]
    args = [x_flat, w9]

    if shortcut is not None:
        xs_nhwc, ws_oihw, s_scale, s_bias = shortcut
        Cs = xs_nhwc.shape[-1]
        assert xs_nhwc.shape[1] == Ho and xs_nhwc.shape[2] == Wo
        # Shortcut activation laid out like the conv output rows: [N, Ho*Wp, Cs].
        xs = jnp.pad(xs_nhwc.astype(jnp.bfloat16),
                     ((0, 0), (0, 0), (0, Wp - Wo), (0, 0))).reshape(N, L, Cs)
        ws = ws_oihw.reshape(c_out, Cs).T.astype(jnp.float32)
        ws = ws * s_scale.astype(jnp.float32)[None, :]
        ws = jnp.pad(ws.astype(jnp.bfloat16), ((0, 0), (0, Np - c_out)))
        bias_total = bias_total + s_bias.astype(jnp.float32)
        in_specs += [
            pl.BlockSpec((1, L, Cs), lambda n, j: (n, 0, 0)),
            pl.BlockSpec((Cs, tn), lambda n, j: (0, j)),
        ]
        args += [xs, ws]

    bp = jnp.pad(bias_total.reshape(1, c_out), ((0, 0), (0, Np - c_out)))
    in_specs.append(pl.BlockSpec((1, tn), lambda n, j: (0, j)))
    args.append(bp)

    out = pl.pallas_call(
        functools.partial(conv3x3_direct_kernel, L=L, Wp=Wp, relu=relu,
                          shortcut=shortcut is not None),
        out_shape=jax.ShapeDtypeStruct((N, L, Np), out_dtype),
        grid=(N, Np // tn),
        in_specs=in_specs,
        out_specs=pl.BlockSpec((1, L, tn), lambda n, j: (n, 0, j)),
        compiler_params=pltpu.CompilerParams(
            dimension_semantics=("parallel", "parallel"),
            vmem_limit_bytes=_vmem_limit_bytes()),
    )(*args)

    # Drop the 2 garbage columns per row and the padded channels (fused slice).
    return out.reshape(N, Ho, Wp, Np)[:, :, :Wo, :c_out]
    # TODO(synk): row-tile (with halo DMA) instead of whole-image blocks for
    # very large feature maps that would not fit VMEM.


# --------------------------------- Glue --------------------------------------

def im2col(x_nhwc, k, stride, pad):
    """Extract k x k patches. Returns ([N, Ho, Wo, k*k*C], Ho, Wo). Fallback only."""
    x = jnp.pad(x_nhwc, ((0, 0), (pad, pad), (pad, pad), (0, 0)))
    _, Hp, Wp, _ = x.shape
    Ho = (Hp - k) // stride + 1
    Wo = (Wp - k) // stride + 1
    patches = []
    for di in range(k):
        for dj in range(k):
            patches.append(
                x[:, di:di + Ho * stride:stride, dj:dj + Wo * stride:stride, :])
    return jnp.concatenate(patches, axis=-1), Ho, Wo


def torch_weight_to_2d(w_oihw):
    """[C_out, C_in, kh, kw] -> [kh*kw*C_in, C_out] matching im2col ordering."""
    c_out, c_in, kh, kw = w_oihw.shape
    return jnp.transpose(w_oihw, (2, 3, 1, 0)).reshape(kh * kw * c_in, c_out)


def fold_bn(gamma, beta, mean, var, eps=BN_EPS):
    scale = gamma / jnp.sqrt(var + eps)
    bias = beta - mean * scale
    return scale, bias


def resblock_forward(x_nchw, params, strides):
    """Pallas implementation of ResBlock.forward (inference). NCHW in/out."""
    x = jnp.transpose(x_nchw, (0, 2, 3, 1))  # -> NHWC
    N = x.shape[0]
    c_out = params["w1"].shape[0]

    s1, b1 = fold_bn(*params["bn1"])
    s2, b2 = fold_bn(*params["bn2"])
    ss, bs = fold_bn(*params["bns"])

    # ---- conv1: 3x3, stride=strides, pad=1, BN, ReLU ----
    if strides == 1:
        y1 = conv3x3_bn_act_direct(x, params["w1"], s1, b1, relu=True)
    else:
        # TODO(synk): im2col-free path for stride>1 (strided pl.ds tap reads or
        # an XLA space-to-depth); keep the K-tiled im2col matmul fallback here.
        p1, Ho, Wo = im2col(x.astype(jnp.bfloat16), 3, strides, 1)
        M = N * Ho * Wo
        y1_2d = matmul_bn_act(p1.reshape(M, -1),
                              torch_weight_to_2d(params["w1"]),
                              s1, b1, relu=True)
        y1 = y1_2d.reshape(N, Ho, Wo, c_out)

    # ---- conv2 (3x3 s1) + BN2 + 1x1 shortcut conv + BNs + add + ReLU:
    #      one fused direct-conv kernel (no im2col of y1). ----
    xs = x[:, ::strides, ::strides, :]
    out = conv3x3_bn_act_direct(
        y1, params["w2"], s2, b2, relu=True,
        shortcut=(xs, params["ws"], ss, bs))

    # bf16 kernel output -> f32, fused with the NHWC->NCHW transpose.
    return jnp.transpose(out.astype(x_nchw.dtype), (0, 3, 1, 2))


# ------------------------- pure-JAX reference (check) -------------------------

def conv_nchw(x, w, stride, pad):
    return lax.conv_general_dilated(
        x, w, window_strides=(stride, stride), padding=[(pad, pad), (pad, pad)],
        dimension_numbers=("NCHW", "OIHW", "NCHW"))


def bn_nchw(x, gamma, beta, mean, var, eps=BN_EPS):
    inv = gamma / jnp.sqrt(var + eps)
    return x * inv[None, :, None, None] + (beta - mean * inv)[None, :, None, None]


def resblock_reference(x, params, strides):
    y = jnp.maximum(bn_nchw(conv_nchw(x, params["w1"], strides, 1), *params["bn1"]), 0.0)
    y = bn_nchw(conv_nchw(y, params["w2"], 1, 1), *params["bn2"])
    sc = bn_nchw(conv_nchw(x, params["ws"], strides, 0), *params["bns"])
    return jnp.maximum(y + sc, 0.0)


# ----------------------------------- main -------------------------------------

if __name__ == "__main__":
    key = jax.random.PRNGKey(0)
    N, C_in, C_out, H, W = 2, 4, 8, 16, 16

    keys = jax.random.split(key, 16)

    def bn_params(k, c):
        k1, k2, k3, k4 = jax.random.split(k, 4)
        gamma = 1.0 + 0.1 * jax.random.normal(k1, (c,), jnp.float32)
        beta = 0.1 * jax.random.normal(k2, (c,), jnp.float32)
        mean = 0.1 * jax.random.normal(k3, (c,), jnp.float32)
        var = jnp.abs(jax.random.normal(k4, (c,), jnp.float32)) + 0.5
        return (gamma, beta, mean, var)

    params = {
        "w1": 0.1 * jax.random.normal(keys[0], (C_out, C_in, 3, 3), jnp.float32),
        "bn1": bn_params(keys[1], C_out),
        "w2": 0.1 * jax.random.normal(keys[2], (C_out, C_out, 3, 3), jnp.float32),
        "bn2": bn_params(keys[3], C_out),
        "ws": 0.1 * jax.random.normal(keys[4], (C_out, C_in, 1, 1), jnp.float32),
        "bns": bn_params(keys[5], C_out),
    }

    x = jax.random.normal(keys[6], (N, C_in, H, W), jnp.float32)

    for strides in (2, 1):
        fwd = jax.jit(functools.partial(resblock_forward, strides=strides))
        out = jax.block_until_ready(fwd(x, params))
        ref = jax.block_until_ready(resblock_reference(x, params, strides))
        Ho = (H + 2 - 3) // strides + 1
        assert out.shape == ref.shape == (N, C_out, Ho, Ho), (out.shape, ref.shape)
        # bf16 MXU operands / bf16 intermediates => relative-style tolerance.
        err = float(jnp.max(jnp.abs(out - ref)))
        tol = 5e-2 * max(1.0, float(jnp.max(jnp.abs(ref))))
        assert err < tol, f"mismatch (strides={strides}): err={err} tol={tol}"

    print("KERNEL_OK")
</pallas_src>

<mosaic_0001>
module attributes {stable_mosaic.version = 11 : i64} {
  func.func @matmul_bn_act_kernel(%arg0: i32, %arg1: i32, %arg2: i32, %arg3: memref<128x128xbf16, #tpu.memory_space<vmem>>, %arg4: memref<128x128xbf16, #tpu.memory_space<vmem>>, %arg5: memref<1x128xf32, #tpu.memory_space<vmem>>, %arg6: memref<1x128xf32, #tpu.memory_space<vmem>>, %arg7: memref<128x128xbf16, #tpu.memory_space<vmem>>, %arg8: memref<128x128xf32, #tpu.memory_space<vmem>>) attributes {dimension_semantics = [#tpu.dimension_semantics<parallel>, #tpu.dimension_semantics<parallel>, #tpu.dimension_semantics<arbitrary>], iteration_bounds = array<i64: 1, 1, 1>, scalar_prefetch = 0 : i64, scratch_operands = 1 : i64, tpu.core_type = #tpu.core_type<tc>, window_params = [{transform_indices = @transform_0, window_bounds = array<i64: 128, 128>}, {transform_indices = @transform_1, window_bounds = array<i64: 128, 128>}, {transform_indices = @transform_2, window_bounds = array<i64: 1, 128>}, {transform_indices = @transform_3, window_bounds = array<i64: 1, 128>}, {transform_indices = @transform_4, window_bounds = array<i64: 128, 128>}]} {
    %c0_i32 = arith.constant 0 : i32
    %0 = arith.cmpi eq, %arg2, %c0_i32 : i32
    %1 = arith.extui %0 : i1 to i32
    %c0_i32_0 = arith.constant 0 : i32
    %2 = arith.cmpi ne, %1, %c0_i32_0 : i32
    scf.if %2 {
      %cst_10 = arith.constant 0.000000e+00 : f32
      %12 = vector.broadcast %cst_10 : f32 to vector<128x128xf32>
      %c0_11 = arith.constant 0 : index
      %c0_12 = arith.constant 0 : index
      %13 = vector.load %arg8[%c0_11, %c0_12] : memref<128x128xf32, #tpu.memory_space<vmem>>, vector<128x128xf32>
      tpu.vector_store %arg8[%c0_11, %c0_12], %12 {strides = array<i32>} : memref<128x128xf32, #tpu.memory_space<vmem>>, vector<128x128xf32>,
    } else {
    }
    %c0 = arith.constant 0 : index
    %c0_1 = arith.constant 0 : index
    %3 = vector.load %arg8[%c0, %c0_1] : memref<128x128xf32, #tpu.memory_space<vmem>>, vector<128x128xf32>
    %c0_2 = arith.constant 0 : index
    %c0_3 = arith.constant 0 : index
    %4 = vector.load %arg3[%c0_2, %c0_3] : memref<128x128xbf16, #tpu.memory_space<vmem>>, vector<128x128xbf16>
    %c0_4 = arith.constant 0 : index
    %c0_5 = arith.constant 0 : index
    %5 = vector.load %arg4[%c0_4, %c0_5] : memref<128x128xbf16, #tpu.memory_space<vmem>>, vector<128x128xbf16>
    %cst = arith.constant dense<0.000000e+00> : vector<128x128xf32>
    %6 = tpu.matmul %4, %5, %cst {dimension_numbers = #tpu.dot_dimension_numbers<[1], [0], [0], [1], [0, 0, 1, 1], [], []>} : vector<128x128xbf16>, vector<128x128xbf16>, vector<128x128xf32> -> vector<128x128xf32>
    %7 = arith.addf %3, %6 : vector<128x128xf32>
    %c0_6 = arith.constant 0 : index
    %c0_7 = arith.constant 0 : index
    %8 = vector.load %arg8[%c0_6, %c0_7] : memref<128x128xf32, #tpu.memory_space<vmem>>, vector<128x128xf32>
    tpu.vector_store %arg8[%c0_6, %c0_7], %7 {strides = array<i32>} : memref<128x128xf32, #tpu.memory_space<vmem>>, vector<128x128xf32>,
    %c0_i32_8 = arith.constant 0 : i32
    %9 = arith.cmpi eq, %arg2, %c0_i32_8 : i32
    %10 = arith.extui %9 : i1 to i32
    %c0_i32_9 = arith.constant 0 : i32
    %11 = arith.cmpi ne, %10, %c0_i32_9 : i32
    scf.if %11 {
      %c0_10 = arith.constant 0 : index
      %c0_11 = arith.constant 0 : index
      %12 = vector.load %arg8[%c0_10, %c0_11] : memref<128x128xf32, #tpu.memory_space<vmem>>, vector<128x128xf32>
      %c0_12 = arith.constant 0 : index
      %c0_13 = arith.constant 0 : index
      %13 = vector.load %arg5[%c0_12, %c0_13] : memref<1x128xf32, #tpu.memory_space<vmem>>, vector<1x128xf32>
      %14 = vector.broadcast %13 : vector<1x128xf32> to vector<128x128xf32>
      %15 = arith.mulf %12, %14 : vector<128x128xf32>
      %c0_14 = arith.constant 0 : index
      %c0_15 = arith.constant 0 : index
      %16 = vector.load %arg6[%c0_14, %c0_15] : memref<1x128xf32, #tpu.memory_space<vmem>>, vector<1x128xf32>
      %17 = vector.broadcast %16 : vector<1x128xf32> to vector<128x128xf32>
      %18 = arith.addf %15, %17 : vector<128x128xf32>
      %cst_16 = arith.constant 0.000000e+00 : f32
      %19 = vector.broadcast %cst_16 : f32 to vector<128x128xf32>
      %20 = arith.maximumf %18, %19 : vector<128x128xf32>
      %21 = arith.truncf %20 : vector<128x128xf32> to vector<128x128xbf16>
      %c0_17 = arith.constant 0 : index
      %c0_18 = arith.constant 0 : index
      %22 = vector.load %arg7[%c0_17, %c0_18] : memref<128x128xbf16, #tpu.memory_space<vmem>>, vector<128x128xbf16>
      tpu.vector_store %arg7[%c0_17, %c0_18], %21 {strides = array<i32>} : memref<128x128xbf16, #tpu.memory_space<vmem>>, vector<128x128xbf16>,
    } else {
    }
    return
  }
  func.func @transform_0(%arg0: i32, %arg1: i32, %arg2: i32) -> (i32, i32) {
    %c0_i32 = arith.constant 0 : i32
    return %arg0, %arg2 : i32, i32
  }
  func.func @transform_1(%arg0: i32, %arg1: i32, %arg2: i32) -> (i32, i32) {
    %c0_i32 = arith.constant 0 : i32
    return %arg2, %arg1 : i32, i32
  }
  func.func @transform_2(%arg0: i32, %arg1: i32, %arg2: i32) -> (i32, i32) {
    %c0_i32 = arith.constant 0 : i32
    %c0_i32_0 = arith.constant 0 : i32
    return %c0_i32, %arg1 : i32, i32
  }
  func.func @transform_3(%arg0: i32, %arg1: i32, %arg2: i32) -> (i32, i32) {
    %c0_i32 = arith.constant 0 : i32
    %c0_i32_0 = arith.constant 0 : i32
    return %c0_i32, %arg1 : i32, i32
  }
  func.func @transform_4(%arg0: i32, %arg1: i32, %arg2: i32) -> (i32, i32) {
    %c0_i32 = arith.constant 0 : i32
    return %arg0, %arg1 : i32, i32
  }
}

module attributes {stable_mosaic.version = 11 : i64} {
  func.func @conv3x3_direct_kernel(%arg0: i32, %arg1: i32, %arg2: memref<1x104x8xbf16, #tpu.memory_space<vmem>>, %arg3: memref<9x8x128xbf16, #tpu.memory_space<vmem>>, %arg4: memref<1x80x4xbf16, #tpu.memory_space<vmem>>, %arg5: memref<4x128xbf16, #tpu.memory_space<vmem>>, %arg6: memref<1x128xf32, #tpu.memory_space<vmem>>, %arg7: memref<1x80x128xbf16, #tpu.memory_space<vmem>>) attributes {dimension_semantics = [#tpu.dimension_semantics<parallel>, #tpu.dimension_semantics<parallel>], iteration_bounds = array<i64: 2, 1>, scalar_prefetch = 0 : i64, scratch_operands = 0 : i64, tpu.core_type = #tpu.core_type<tc>, window_params = [{transform_indices = @transform_0, window_bounds = array<i64: 1, 104, 8>}, {transform_indices = @transform_1, window_bounds = array<i64: 9, 8, 128>}, {transform_indices = @transform_2, window_bounds = array<i64: 1, 80, 4>}, {transform_indices = @transform_3, window_bounds = array<i64: 4, 128>}, {transform_indices = @transform_4, window_bounds = array<i64: 1, 128>}, {transform_indices = @transform_5, window_bounds = array<i64: 1, 80, 128>}]} {
    %c0 = arith.constant 0 : index
    %c0_0 = arith.constant 0 : index
    %c0_1 = arith.constant 0 : index
    %0 = vector.load %arg4[%c0, %c0_0, %c0_1] : memref<1x80x4xbf16, #tpu.memory_space<vmem>>, vector<1x80x4xbf16>
    %1 = vector.shape_cast %0 : vector<1x80x4xbf16> to vector<80x4xbf16>
    %c0_2 = arith.constant 0 : index
    %c0_3 = arith.constant 0 : index
    %2 = vector.load %arg5[%c0_2, %c0_3] : memref<4x128xbf16, #tpu.memory_space<vmem>>, vector<4x128xbf16>
    %cst = arith.constant dense<0.000000e+00> : vector<80x128xf32>
    %3 = tpu.matmul %1, %2, %cst {dimension_numbers = #tpu.dot_dimension_numbers<[1], [0], [0], [1], [0, 0, 1, 1], [], []>} : vector<80x4xbf16>, vector<4x128xbf16>, vector<80x128xf32> -> vector<80x128xf32>
    %c0_4 = arith.constant 0 : index
    %c0_5 = arith.constant 0 : index
    %c0_6 = arith.constant 0 : index
    %4 = vector.load %arg2[%c0_4, %c0_5, %c0_6] : memref<1x104x8xbf16, #tpu.memory_space<vmem>>, vector<1x80x8xbf16>
    %5 = vector.shape_cast %4 : vector<1x80x8xbf16> to vector<80x8xbf16>
    %c0_7 = arith.constant 0 : index
    %c0_8 = arith.constant 0 : index
    %c0_9 = arith.constant 0 : index
    %6 = vector.load %arg3[%c0_7, %c0_8, %c0_9] : memref<9x8x128xbf16, #tpu.memory_space<vmem>>, vector<1x8x128xbf16>
    %7 = vector.shape_cast %6 : vector<1x8x128xbf16> to vector<8x128xbf16>
    %cst_10 = arith.constant dense<0.000000e+00> : vector<80x128xf32>
    %8 = tpu.matmul %5, %7, %cst_10 {dimension_numbers = #tpu.dot_dimension_numbers<[1], [0], [0], [1], [0, 0, 1, 1], [], []>} : vector<80x8xbf16>, vector<8x128xbf16>, vector<80x128xf32> -> vector<80x128xf32>
    %9 = arith.addf %3, %8 : vector<80x128xf32>
    %c0_11 = arith.constant 0 : index
    %c1 = arith.constant 1 : index
    %c0_12 = arith.constant 0 : index
    %10 = vector.load %arg2[%c0_11, %c1, %c0_12] : memref<1x104x8xbf16, #tpu.memory_space<vmem>>, vector<1x80x8xbf16>
    %11 = vector.shape_cast %10 : vector<1x80x8xbf16> to vector<80x8xbf16>
    %c1_13 = arith.constant 1 : index
    %c0_14 = arith.constant 0 : index
    %c0_15 = arith.constant 0 : index
    %12 = vector.load %arg3[%c1_13, %c0_14, %c0_15] : memref<9x8x128xbf16, #tpu.memory_space<vmem>>, vector<1x8x128xbf16>
    %13 = vector.shape_cast %12 : vector<1x8x128xbf16> to vector<8x128xbf16>
    %cst_16 = arith.constant dense<0.000000e+00> : vector<80x128xf32>
    %14 = tpu.matmul %11, %13, %cst_16 {dimension_numbers = #tpu.dot_dimension_numbers<[1], [0], [0], [1], [0, 0, 1, 1], [], []>} : vector<80x8xbf16>, vector<8x128xbf16>, vector<80x128xf32> -> vector<80x128xf32>
    %15 = arith.addf %9, %14 : vector<80x128xf32>
    %c0_17 = arith.constant 0 : index
    %c2 = arith.constant 2 : index
    %c0_18 = arith.constant 0 : index
    %16 = vector.load %arg2[%c0_17, %c2, %c0_18] : memref<1x104x8xbf16, #tpu.memory_space<vmem>>, vector<1x80x8xbf16>
    %17 = vector.shape_cast %16 : vector<1x80x8xbf16> to vector<80x8xbf16>
    %c2_19 = arith.constant 2 : index
    %c0_20 = arith.constant 0 : index
    %c0_21 = arith.constant 0 : index
    %18 = vector.load %arg3[%c2_19, %c0_20, %c0_21] : memref<9x8x128xbf16, #tpu.memory_space<vmem>>, vector<1x8x128xbf16>
    %19 = vector.shape_cast %18 : vector<1x8x128xbf16> to vector<8x128xbf16>
    %cst_22 = arith.constant dense<0.000000e+00> : vector<80x128xf32>
    %20 = tpu.matmul %17, %19, %cst_22 {dimension_numbers = #tpu.dot_dimension_numbers<[1], [0], [0], [1], [0, 0, 1, 1], [], []>} : vector<80x8xbf16>, vector<8x128xbf16>, vector<80x128xf32> -> vector<80x128xf32>
    %21 = arith.addf %15, %20 : vector<80x128xf32>
    %c0_23 = arith.constant 0 : index
    %c10 = arith.constant 10 : index
    %c0_24 = arith.constant 0 : index
    %22 = vector.load %arg2[%c0_23, %c10, %c0_24] : memref<1x104x8xbf16, #tpu.memory_space<vmem>>, vector<1x80x8xbf16>
    %23 = vector.shape_cast %22 : vector<1x80x8xbf16> to vector<80x8xbf16>
    %c3 = arith.constant 3 : index
    %c0_25 = arith.constant 0 : index
    %c0_26 = arith.constant 0 : index
    %24 = vector.load %arg3[%c3, %c0_25, %c0_26] : memref<9x8x128xbf16, #tpu.memory_space<vmem>>, vector<1x8x128xbf16>
    %25 = vector.shape_cast %24 : vector<1x8x128xbf16> to vector<8x128xbf16>
    %cst_27 = arith.constant dense<0.000000e+00> : vector<80x128xf32>
    %26 = tpu.matmul %23, %25, %cst_27 {dimension_numbers = #tpu.dot_dimension_numbers<[1], [0], [0], [1], [0, 0, 1, 1], [], []>} : vector<80x8xbf16>, vector<8x128xbf16>, vector<80x128xf32> -> vector<80x128xf32>
    %27 = arith.addf %21, %26 : vector<80x128xf32>
    %c0_28 = arith.constant 0 : index
    %c11 = arith.constant 11 : index
    %c0_29 = arith.constant 0 : index
    %28 = vector.load %arg2[%c0_28, %c11, %c0_29] : memref<1x104x8xbf16, #tpu.memory_space<vmem>>, vector<1x80x8xbf16>
    %29 = vector.shape_cast %28 : vector<1x80x8xbf16> to vector<80x8xbf16>
    %c4 = arith.constant 4 : index
    %c0_30 = arith.constant 0 : index
    %c0_31 = arith.constant 0 : index
    %30 = vector.load %arg3[%c4, %c0_30, %c0_31] : memref<9x8x128xbf16, #tpu.memory_space<vmem>>, vector<1x8x128xbf16>
    %31 = vector.shape_cast %30 : vector<1x8x128xbf16> to vector<8x128xbf16>
    %cst_32 = arith.constant dense<0.000000e+00> : vector<80x128xf32>
    %32 = tpu.matmul %29, %31, %cst_32 {dimension_numbers = #tpu.dot_dimension_numbers<[1], [0], [0], [1], [0, 0, 1, 1], [], []>} : vector<80x8xbf16>, vector<8x128xbf16>, vector<80x128xf32> -> vector<80x128xf32>
    %33 = arith.addf %27, %32 : vector<80x128xf32>
    %c0_33 = arith.constant 0 : index
    %c12 = arith.constant 12 : index
    %c0_34 = arith.constant 0 : index
    %34 = vector.load %arg2[%c0_33, %c12, %c0_34] : memref<1x104x8xbf16, #tpu.memory_space<vmem>>, vector<1x80x8xbf16>
    %35 = vector.shape_cast %34 : vector<1x80x8xbf16> to vector<80x8xbf16>
    %c5 = arith.constant 5 : index
    %c0_35 = arith.constant 0 : index
    %c0_36 = arith.constant 0 : index
    %36 = vector.load %arg3[%c5, %c0_35, %c0_36] : memref<9x8x128xbf16, #tpu.memory_space<vmem>>, vector<1x8x128xbf16>
    %37 = vector.shape_cast %36 : vector<1x8x128xbf16> to vector<8x128xbf16>
    %cst_37 = arith.constant dense<0.000000e+00> : vector<80x128xf32>
    %38 = tpu.matmul %35, %37, %cst_37 {dimension_numbers = #tpu.dot_dimension_numbers<[1], [0], [0], [1], [0, 0, 1, 1], [], []>} : vector<80x8xbf16>, vector<8x128xbf16>, vector<80x128xf32> -> vector<80x128xf32>
    %39 = arith.addf %33, %38 : vector<80x128xf32>
    %c0_38 = arith.constant 0 : index
    %c20 = arith.constant 20 : index
    %c0_39 = arith.constant 0 : index
    %40 = vector.load %arg2[%c0_38, %c20, %c0_39] : memref<1x104x8xbf16, #tpu.memory_space<vmem>>, vector<1x80x8xbf16>
    %41 = vector.shape_cast %40 : vector<1x80x8xbf16> to vector<80x8xbf16>
    %c6 = arith.constant 6 : index
    %c0_40 = arith.constant 0 : index
    %c0_41 = arith.constant 0 : index
    %42 = vector.load %arg3[%c6, %c0_40, %c0_41] : memref<9x8x128xbf16, #tpu.memory_space<vmem>>, vector<1x8x128xbf16>
    %43 = vector.shape_cast %42 : vector<1x8x128xbf16> to vector<8x128xbf16>
    %cst_42 = arith.constant dense<0.000000e+00> : vector<80x128xf32>
    %44 = tpu.matmul %41, %43, %cst_42 {dimension_numbers = #tpu.dot_dimension_numbers<[1], [0], [0], [1], [0, 0, 1, 1], [], []>} : vector<80x8xbf16>, vector<8x128xbf16>, vector<80x128xf32> -> vector<80x128xf32>
    %45 = arith.addf %39, %44 : vector<80x128xf32>
    %c0_43 = arith.constant 0 : index
    %c21 = arith.constant 21 : index
    %c0_44 = arith.constant 0 : index
    %46 = vector.load %arg2[%c0_43, %c21, %c0_44] : memref<1x104x8xbf16, #tpu.memory_space<vmem>>, vector<1x80x8xbf16>
    %47 = vector.shape_cast %46 : vector<1x80x8xbf16> to vector<80x8xbf16>
    %c7 = arith.constant 7 : index
    %c0_45 = arith.constant 0 : index
    %c0_46 = arith.constant 0 : index
    %48 = vector.load %arg3[%c7, %c0_45, %c0_46] : memref<9x8x128xbf16, #tpu.memory_space<vmem>>, vector<1x8x128xbf16>
    %49 = vector.shape_cast %48 : vector<1x8x128xbf16> to vector<8x128xbf16>
    %cst_47 = arith.constant dense<0.000000e+00> : vector<80x128xf32>
    %50 = tpu.matmul %47, %49, %cst_47 {dimension_numbers = #tpu.dot_dimension_numbers<[1], [0], [0], [1], [0, 0, 1, 1], [], []>} : vector<80x8xbf16>, vector<8x128xbf16>, vector<80x128xf32> -> vector<80x128xf32>
    %51 = arith.addf %45, %50 : vector<80x128xf32>
    %c0_48 = arith.constant 0 : index
    %c22 = arith.constant 22 : index
    %c0_49 = arith.constant 0 : index
    %52 = vector.load %arg2[%c0_48, %c22, %c0_49] : memref<1x104x8xbf16, #tpu.memory_space<vmem>>, vector<1x80x8xbf16>
    %53 = vector.shape_cast %52 : vector<1x80x8xbf16> to vector<80x8xbf16>
    %c8 = arith.constant 8 : index
    %c0_50 = arith.constant 0 : index
    %c0_51 = arith.constant 0 : index
    %54 = vector.load %arg3[%c8, %c0_50, %c0_51] : memref<9x8x128xbf16, #tpu.memory_space<vmem>>, vector<1x8x128xbf16>
    %55 = vector.shape_cast %54 : vector<1x8x128xbf16> to vector<8x128xbf16>
    %cst_52 = arith.constant dense<0.000000e+00> : vector<80x128xf32>
    %56 = tpu.matmul %53, %55, %cst_52 {dimension_numbers = #tpu.dot_dimension_numbers<[1], [0], [0], [1], [0, 0, 1, 1], [], []>} : vector<80x8xbf16>, vector<8x128xbf16>, vector<80x128xf32> -> vector<80x128xf32>
    %57 = arith.addf %51, %56 : vector<80x128xf32>
    %c0_53 = arith.constant 0 : index
    %c0_54 = arith.constant 0 : index
    %58 = vector.load %arg6[%c0_53, %c0_54] : memref<1x128xf32, #tpu.memory_space<vmem>>, vector<1x128xf32>
    %59 = vector.broadcast %58 : vector<1x128xf32> to vector<80x128xf32>
    %60 = arith.addf %57, %59 : vector<80x128xf32>
    %cst_55 = arith.constant 0.000000e+00 : f32
    %61 = vector.broadcast %cst_55 : f32 to vector<80x128xf32>
    %62 = arith.maximumf %60, %61 : vector<80x128xf32>
    %63 = arith.truncf %62 : vector<80x128xf32> to vector<80x128xbf16>
    %c0_56 = arith.constant 0 : index
    %c0_57 = arith.constant 0 : index
    %c0_58 = arith.constant 0 : index
    %64 = vector.load %arg7[%c0_56, %c0_57, %c0_58] : memref<1x80x128xbf16, #tpu.memory_space<vmem>>, vector<1x80x128xbf16>
    %65 = vector.shape_cast %64 : vector<1x80x128xbf16> to vector<80x128xbf16>
    %66 = vector.shape_cast %63 : vector<80x128xbf16> to vector<1x80x128xbf16>
    tpu.vector_store %arg7[%c0_56, %c0_57, %c0_58], %66 {strides = array<i32>} : memref<1x80x128xbf16, #tpu.memory_space<vmem>>, vector<1x80x128xbf16>,
    return
  }
  func.func @transform_0(%arg0: i32, %arg1: i32) -> (i32, i32, i32) {
    %c0_i32 = arith.constant 0 : i32
    %c0_i32_0 = arith.constant 0 : i32
    %c0_i32_1 = arith.constant 0 : i32
    return %arg0, %c0_i32, %c0_i32_0 : i32, i32, i32
  }
  func.func @transform_1(%arg0: i32, %arg1: i32) -> (i32, i32, i32) {
    %c0_i32 = arith.constant 0 : i32
    %c0_i32_0 = arith.constant 0 : i32
    %c0_i32_1 = arith.constant 0 : i32
    return %c0_i32, %c0_i32_0, %arg1 : i32, i32, i32
  }
  func.func @transform_2(%arg0: i32, %arg1: i32) -> (i32, i32, i32) {
    %c0_i32 = arith.constant 0 : i32
    %c0_i32_0 = arith.constant 0 : i32
    %c0_i32_1 = arith.constant 0 : i32
    return %arg0, %c0_i32, %c0_i32_0 : i32, i32, i32
  }
  func.func @transform_3(%arg0: i32, %arg1: i32) -> (i32, i32) {
    %c0_i32 = arith.constant 0 : i32
    %c0_i32_0 = arith.constant 0 : i32
    return %c0_i32, %arg1 : i32, i32
  }
  func.func @transform_4(%arg0: i32, %arg1: i32) -> (i32, i32) {
    %c0_i32 = arith.constant 0 : i32
    %c0_i32_0 = arith.constant 0 : i32
    return %c0_i32, %arg1 : i32, i32
  }
  func.func @transform_5(%arg0: i32, %arg1: i32) -> (i32, i32, i32) {
    %c0_i32 = arith.constant 0 : i32
    %c0_i32_0 = arith.constant 0 : i32
    return %arg0, %c0_i32, %arg1 : i32, i32, i32
  }
}

</mosaic_0001>

<bundles_post_ra>
// kernel: resblock_forward.2
= control target key start
LH: loop header
LB: loop body
LE: loop exit
PB: predicated region body
PF: predicated region fallthrough
CT: control target
= control target key end

     0   :  { %s774_s1 = inlined_call_operand.vmem [shape: bf16[128,128], index: 1, kind: input, shape index: {}]   ;;  %s775_s0 = inlined_call_operand.vmem [shape: bf16[128,128], index: 0, kind: input, shape index: {}]   ;;  %s776_s2 = inlined_call_operand.vmem [shape: f32[1,128], index: 2, kind: input, shape index: {}]   ;;  %s777_s3 = inlined_call_operand.vmem [shape: f32[1,128], index: 3, kind: input, shape index: {}]   ;;  %s778_s4 = inlined_call_operand.vmem [shape: bf16[128,128], index: 4, kind: output, shape index: {}]  }
   0x1   :  { %v637_v0 = vld [vmem:[%s774_s1] sm:$0xff]   ;;  %v638_v1 = vld [vmem:[%s774_s1 + $0x8] sm:$0xff]   ;;  %v639_v2 = vld [vmem:[%s774_s1 + $0x10] sm:$0xff]  }
   0x2   :  { %589 = vmatprep.subr.bf16.mxu0 %v637_v0  ;;  %621 = vmatprep.subr.bf16.mxu1 %v637_v0  ;;  %v640_v3 = vld [vmem:[%s774_s1 + $0x18] sm:$0xff]   ;;  %v645_v4 = vld [vmem:[%s775_s0] sm:$0xff]   ;;  %v642_v7 = vld [vmem:[%s774_s1 + $0x28] sm:$0xff]  }
   0x3   :  { %590 = vmatpush3.bf16.msra.mxu0 %v637_v0  ;;  %629 = vmatpush3.bf16.msra.mxu1 %v637_v0  ;;  %v646_v5 = vld [vmem:[%s775_s0 + $0x20] sm:$0xff]   ;;  %v643_v8 = vld [vmem:[%s774_s1 + $0x30] sm:$0xff]   ;;  %v644_v9 = vld [vmem:[%s774_s1 + $0x38] sm:$0xff]  }
   0x4   :  { %591 = vmatprep.subr.bf16.mxu0 %v638_v1  ;;  %622 = vmatprep.subr.bf16.mxu1 %v638_v1  ;;  %v641_v6 = vld [vmem:[%s774_s1 + $0x20] sm:$0xff]   ;;  %v647_v10 = vld [vmem:[%s775_s0 + $0x8] sm:$0xff]   ;;  %v649_v12 = vld [vmem:[%s775_s0 + $0x10] sm:$0xff]  }
   0x5   :  { %605 = vmatprep.mubr.bf16.mxu0 %v645_v4  ;;  %613 = vmatprep.mubr.bf16.mxu1 %v646_v5  ;;  %v648_v11 = vld [vmem:[%s775_s0 + $0x28] sm:$0xff]   ;;  %v650_v13 = vld [vmem:[%s775_s0 + $0x30] sm:$0xff]   ;;  %v651_v14 = vld [vmem:[%s775_s0 + $0x18] sm:$0xff]  }
   0x6   :  { %v652_v15 = vld [vmem:[%s775_s0 + $0x38] sm:$0xff]   ;;  %v492_v16 = vld [vmem:[%s776_s2] ss:$0 sm:$0xff] }
   0x7   :  { %592 = vmatpush3.bf16.msra.mxu0 %v638_v1  ;;  %630 = vmatpush3.bf16.msra.mxu1 %v638_v1  ;;  %v732_v18 = vld [vmem:[%s777_s3] ss:$0 sm:$0xff] }
   0x8   :  { %593 = vmatprep.subr.bf16.mxu0 %v639_v2  ;;  %623 = vmatprep.subr.bf16.mxu1 %v639_v2 }
   0xb   :  { %594 = vmatpush3.bf16.msra.mxu0 %v639_v2  ;;  %631 = vmatpush3.bf16.msra.mxu1 %v639_v2 }
   0xc   :  { %595 = vmatprep.subr.bf16.mxu0 %v640_v3  ;;  %624 = vmatprep.subr.bf16.mxu1 %v640_v3 }
   0xf   :  { %596 = vmatpush3.bf16.msra.mxu0 %v640_v3  ;;  %632 = vmatpush3.bf16.msra.mxu1 %v640_v3 }
  0x10   :  { %597 = vmatprep.subr.bf16.mxu0 %v641_v6  ;;  %625 = vmatprep.subr.bf16.mxu1 %v641_v6 }
  0x13   :  { %598 = vmatpush3.bf16.msra.mxu0 %v641_v6  ;;  %633 = vmatpush3.bf16.msra.mxu1 %v641_v6 }
  0x14   :  { %599 = vmatprep.subr.bf16.mxu0 %v642_v7  ;;  %626 = vmatprep.subr.bf16.mxu1 %v642_v7 }
  0x17   :  { %600 = vmatpush3.bf16.msra.mxu0 %v642_v7  ;;  %634 = vmatpush3.bf16.msra.mxu1 %v642_v7 }
  0x18   :  { %601 = vmatprep.subr.bf16.mxu0 %v643_v8  ;;  %627 = vmatprep.subr.bf16.mxu1 %v643_v8 }
  0x1b   :  { %602 = vmatpush3.bf16.msra.mxu0 %v643_v8  ;;  %635 = vmatpush3.bf16.msra.mxu1 %v643_v8 }
  0x1c   :  { %603 = vmatprep.subr.bf16.mxu0 %v644_v9  ;;  %628 = vmatprep.subr.bf16.mxu1 %v644_v9 }
  0x1f   :  { %604 = vmatpush3.bf16.msra.mxu0 %v644_v9  ;;  %636 = vmatpush3.bf16.msra.mxu1 %v644_v9 }
  0x22   :  { %606 = vmatmul.mubr.bf16.vlgmr.msra.gmra.mrb[0].mxu0 %v647_v10  ;;  %614 = vmatmul.mubr.bf16.vlgmr.msra.gmra.mrb[0].mxu1 %v648_v11 }
  0x23   :  { %609 = vmatprep.mubr.bf16.mxu0 %v649_v12  ;;  %617 = vmatprep.mubr.bf16.mxu1 %v650_v13 }
  0x2a   :  { %610 = vmatmul.mubr.bf16.gmra.mrb[4].mxu0 %v651_v14  ;;  %618 = vmatmul.mubr.bf16.gmra.mrb[4].mxu1 %v652_v15 }
  0xf5   :  { %v607_v17 = vpop.f32.mrb[0].mxu0  ;;  %v615_v19 = vpop.f32.mrb[0].mxu1 }
  0xf6   :  { %v339_v20 = vmul.f32 %v607_v17, %v492_v16  ;;  %v347_v21 = vmul.f32 %v615_v19, %v492_v16  ;;  %v216_v22 = vpop.f32.mrb[1].mxu0  ;;  %v248_v23 = vpop.f32.mrb[1].mxu1 }
  0xf7   :  { %v337_v24 = vmul.f32 %v492_v16, %v216_v22  ;;  %v345_v25 = vmul.f32 %v492_v16, %v248_v23  ;;  %v608_v26 = vpop.f32.mrb[2].mxu0  ;;  %v616_v27 = vpop.f32.mrb[2].mxu1 }
  0xf8   :  { %v362_v28 = vadd.f32 %v732_v18, %v339_v20  ;;  %v370_v29 = vadd.f32 %v732_v18, %v347_v21  ;;  %v340_v30 = vmul.f32 %v608_v26, %v492_v16  ;;  %v348_v31 = vmul.f32 %v616_v27, %v492_v16  ;;  %v219_v32 = vpop.f32.mrb[3].mxu0  ;;  %v251_v33 = vpop.f32.mrb[3].mxu1 }
  0xf9   :  { %v360_v34 = vadd.f32 %v732_v18, %v337_v24  ;;  %v368_v35 = vadd.f32 %v732_v18, %v345_v25  ;;  %v338_v36 = vmul.f32 %v492_v16, %v219_v32  ;;  %v346_v37 = vmul.f32 %v492_v16, %v251_v33 }
  0xfa   :  { %v363_v38 = vadd.f32 %v732_v18, %v340_v30  ;;  %v371_v39 = vadd.f32 %v732_v18, %v348_v31  ;;  %v378_v42 = vmax.f32 %v362_v28, 0.0  ;;  %v386_v43 = vmax.f32 %v370_v29, 0.0 }
  0xfb   :  { %v361_v40 = vadd.f32 %v732_v18, %v338_v36  ;;  %v369_v41 = vadd.f32 %v732_v18, %v346_v37  ;;  %v376_v46 = vmax.f32 %v360_v34, 0.0  ;;  %v384_v47 = vmax.f32 %v368_v35, 0.0 }
  0xfc   :  { %v379_v44 = vmax.f32 %v363_v38, 0.0  ;;  %v387_v45 = vmax.f32 %v371_v39, 0.0 }
  0xfd   :  { %v377_v48 = vmax.f32 %v361_v40, 0.0  ;;  %v385_v49 = vmax.f32 %v369_v41, 0.0  ;;  %v611_v50 = vpop.f32.mrb[4].mxu0  ;;  %v619_v51 = vpop.f32.mrb[4].mxu1 }
  0xfe   :  { %v534_v52 = vpack.c.bf16 %v379_v44, %v378_v42  ;;  %v554_v53 = vpack.c.bf16 %v387_v45, %v386_v43  ;;  %v343_v54 = vmul.f32 %v611_v50, %v492_v16  ;;  %v351_v55 = vmul.f32 %v619_v51, %v492_v16  ;;  %v232_v56 = vpop.f32.mrb[5].mxu0  ;;  %v264_v57 = vpop.f32.mrb[5].mxu1 }
  0xff   :  { %v529_v58 = vpack.c.bf16 %v377_v48, %v376_v46  ;;  %v549_v59 = vpack.c.bf16 %v385_v49, %v384_v47  ;;  %v341_v60 = vmul.f32 %v492_v16, %v232_v56  ;;  %v349_v61 = vmul.f32 %v492_v16, %v264_v57  ;;  %v612_v62 = vpop.f32.mrb[6].mxu0  ;;  %v620_v63 = vpop.f32.mrb[6].mxu1 }
 0x100   :  { %566 = vst [vmem:[%s778_s4 + $0x8] sm:$0xff] %v534_v52   ;;  %570 = vst [vmem:[%s778_s4 + $0x28] sm:$0xff] %v554_v53   ;;  %v366_v0 = vadd.f32 %v732_v18, %v343_v54  ;;  %v374_v1 = vadd.f32 %v732_v18, %v351_v55  ;;  %v344_v2 = vmul.f32 %v612_v62, %v492_v16  ;;  %v235_v4 = vpop.f32.mrb[7].mxu0  ;;  %v267_v5 = vpop.f32.mrb[7].mxu1 }
 0x101   :  { %v352_v3 = vmul.f32 %v620_v63, %v492_v16  ;;  %530 = vst [vmem:[%s778_s4] sm:$0xff] %v529_v58   ;;  %569 = vst [vmem:[%s778_s4 + $0x20] sm:$0xff] %v549_v59   ;;  %v364_v6 = vadd.f32 %v732_v18, %v341_v60  ;;  %v372_v7 = vadd.f32 %v732_v18, %v349_v61 }
 0x102   :  { %v342_v8 = vmul.f32 %v492_v16, %v235_v4  ;;  %v350_v9 = vmul.f32 %v492_v16, %v267_v5  ;;  %v367_v10 = vadd.f32 %v732_v18, %v344_v2  ;;  %v382_v14 = vmax.f32 %v366_v0, 0.0 }
 0x103   :  { %v375_v11 = vadd.f32 %v732_v18, %v352_v3  ;;  %v390_v15 = vmax.f32 %v374_v1, 0.0  ;;  %v380_v20 = vmax.f32 %v364_v6, 0.0  ;;  %v388_v21 = vmax.f32 %v372_v7, 0.0 }
 0x104   :  { %v365_v12 = vadd.f32 %v732_v18, %v342_v8  ;;  %v373_v13 = vadd.f32 %v732_v18, %v350_v9  ;;  %v383_v17 = vmax.f32 %v367_v10, 0.0 }
 0x105   :  { %v391_v19 = vmax.f32 %v375_v11, 0.0 }
 0x106   :  { %v381_v22 = vmax.f32 %v365_v12, 0.0  ;;  %v389_v23 = vmax.f32 %v373_v13, 0.0  ;;  %v544_v24 = vpack.c.bf16 %v383_v17, %v382_v14 }
 0x107   :  { %v564_v25 = vpack.c.bf16 %v391_v19, %v390_v15 }
 0x108   :  { %v539_v26 = vpack.c.bf16 %v381_v22, %v380_v20  ;;  %v559_v16 = vpack.c.bf16 %v389_v23, %v388_v21  ;;  %568 = vst [vmem:[%s778_s4 + $0x18] sm:$0xff] %v544_v24  }
 0x109   :  { %572 = vst [vmem:[%s778_s4 + $0x38] sm:$0xff] %v564_v25  }
 0x10a   :  { %567 = vst [vmem:[%s778_s4 + $0x10] sm:$0xff] %v539_v26   ;;  %571 = vst [vmem:[%s778_s4 + $0x30] sm:$0xff] %v559_v16  }

// kernel: resblock_forward.3
= control target key start
LH: loop header
LB: loop body
LE: loop exit
PB: predicated region body
PF: predicated region fallthrough
CT: control target
= control target key end

     0   :  { %s2504_s18 = smov 0   ;;  %s2506_s19 = smov 0   ;;  %s2938_s0 = inlined_call_operand.vmem [shape: bf16[2,104,8], index: 0, kind: input, shape index: {}]   ;;  %s2939_s1 = inlined_call_operand.vmem [shape: bf16[9,8,128], index: 1, kind: input, shape index: {}]   ;;  %s2940_s2 = inlined_call_operand.vmem [shape: bf16[2,80,4], index: 2, kind: input, shape index: {}]   ;;  %s2941_s3 = inlined_call_operand.vmem [shape: bf16[4,128], index: 3, kind: input, shape index: {}]   ;;  %s2942_s4 = inlined_call_operand.vmem [shape: f32[1,128], index: 4, kind: input, shape index: {}]   ;;  %s2943_s5 = inlined_call_operand.vmem [shape: bf16[2,80,128], index: 5, kind: output, shape index: {}]  }
   0x1   :  { %s2508_s20 = smov 0  }
   0x2 LB: > { %s27_s21 = sadd.s32 1, %s2466_s19  ;;  %p1960_p0 = scmp.ge.s32.totalorder %s2470_s20, 1  ;;  %s2470_s20 = sphi %s2508_s20, %s15_s20   ;;  %s2466_s19 = sphi %s2506_s19, %s2945_s19   ;;  %s2462_s18 = sphi %s2504_s18, %s2944_s18  }
   0x3   : > { %p29_p1 = scmp.ge.s32.totalorder %s27_s21, 2  ;;  %p237_p2 = scmp.lt.s32.totalorder %s2470_s20, 3 }
   0x5   : > { %s2947_s21 = smov (%p29_p1, %s27_s21), 0  ;;  %p238_p3 = pnand %p1960_p0, %p237_p2 }
   0x6   : > { %v335_v0 = vld [vmem:[%s2939_s1] sm:$0xf] (!%p238_p3)  ;;  %vm377_vm0 = vcmask (!%p238_p3), 1043456   ;;  %v2472_v2 = vmov (!%p238_p3), 0.0   ;;  %vm495_vm1 = vcmask (!%p238_p3), 1041408   ;;  %p284_p4 = scmp.lt.s32.totalorder (!%p238_p3), %s2462_s18, 1 }
   0x7   : > { %241 = sbr.rel (%p238_p3) target bundleno = 436 (0x1b4), region = 40  ;;  %v324_v1 = vld [vmem:[%s2941_s3] sm:$0x3] (!%p238_p3)  ;;  %2167 = vmatprep.subr.bf16.mxu0 (!%p238_p3), %v2472_v2  ;;  %v379_v3 = vsel (!%p238_p3), %vm377_vm0, %v335_v0, 0  ;;  %2189 = vmatprep.subr.bf16.mxu1 (!%p238_p3), %v2472_v2  ;;  %vm2473_vm2 = vmmov (!%p238_p3), 0   ;;  %vm361_vm3 = vcmask (!%p238_p3), 64512  }
   0x8   : > { %2168 = vmatpush3.bf16.msra.mxu0 (!%p238_p3), %v379_v3  ;;  %v497_v4 = vsel (!%p238_p3), %vm495_vm1, %v324_v1, 0  ;;  %2169 = vmatprep.mubr.msk.bf16.mxu0 (!%p238_p3), %vm2473_vm2, %v2472_v2  ;;  %v1984_v5 = vld [vmem:[%s2939_s1 + $0x4] sm:$0xf] (!%p238_p3)  ;;  %v1996_v6 = vld [vmem:[%s2939_s1 + $0x8] sm:$0xf] (!%p238_p3)  ;;  %vm479_vm4 = vcmask (!%p238_p3), 31744  }
   0x9   : > { %2190 = vmatpush3.bf16.msra.mxu1 (!%p238_p3), %v497_v4  ;;  %2191 = vmatprep.mubr.msk.bf16.mxu1 (!%p238_p3), %vm2473_vm2, %v2472_v2  ;;  %v674_v8 = vsel (!%p238_p3), %vm377_vm0, %v1984_v5, 0  ;;  %v793_v10 = vsel (!%p238_p3), %vm377_vm0, %v1996_v6, 0  ;;  %vm765_vm5 = vcmask (!%p238_p3), 1046528   ;;  %vm613_vm6 = vsmask.f32 (!%p238_p3), 7424 }
   0xa   : > { %2211 = vmatprep.subr.bf16.mxu0 (!%p238_p3), %v2472_v2  ;;  %2233 = vmatprep.subr.bf16.mxu1 (!%p238_p3), %v2472_v2  ;;  %v2003_v39 = vld [vmem:[%s2939_s1 + $0xc] sm:$0xf] (!%p238_p3)  ;;  %v2015_v40 = vld [vmem:[%s2939_s1 + $0x10] sm:$0xf] (!%p238_p3)  ;;  %vm1037_vm7 = vsmask.f32 (!%p238_p3), 6400 }
   0xb   : > { %v946_v45 = vsel (!%p238_p3), %vm377_vm0, %v2003_v39, 0  ;;  %v1107_v46 = vsel (!%p238_p3), %vm377_vm0, %v2015_v40, 0  ;;  %vm1198_vm8 = vcmask (!%p238_p3), 1045504   ;;  %vm1470_vm9 = vsmask.f32 (!%p238_p3), 5376 }
   0xc   : > { %vm1631_vm10 = vcmask (!%p238_p3), 1044480  }
   0xe   : > { %s2949_s18 = smov (!%p284_p4, %s2462_s18), 1 }
   0xf   : > { %s2387_s26 = smul.u32 52, %s2949_s18 }
  0x10   : > { %s2388_s29 = smul.u32 40, %s2949_s18 }
  0x11   : > { %s2550_s9 = scalar_lea.vmem %s2938_s0, %s2387_s26 }
  0x12   : > { %v2415_v7 = vld [vmem:[%s2550_s9] sm:$0xff]   ;;  %s2558_s12 = scalar_lea.vmem %s2940_s2, %s2388_s29  ;;  %v2417_v11 = vld [vmem:[%s2550_s9 + $0x8] sm:$0xff]   ;;  %v2419_v13 = vld [vmem:[%s2550_s9 + $0x10] sm:$0xff]  }
  0x13   : > { %v2416_v9 = vld [vmem:[%s2558_s12] sm:$0xff]   ;;  %2170 = vmatmul.mubr.msk.bf16.vlgmr.msra.gmra.mrb[0].mxu0 %vm361_vm3, %v2415_v7  ;;  %v2418_v12 = vld [vmem:[%s2558_s12 + $0x8] sm:$0xff]   ;;  %v2420_v14 = vld [vmem:[%s2558_s12 + $0x10] sm:$0xff]  }
  0x14   : > { %2192 = vmatmul.mubr.msk.bf16.vlgmr.msra.gmra.mrb[0].mxu1 %vm479_vm4, %v2416_v9  ;;  %2212 = vmatpush3.bf16.msra.mxu0 %v674_v8  ;;  %v572_v15 = vld [vmem:[%s2550_s9] sm:$0xf]  ;;  %v573_v16 = vld [vmem:[%s2550_s9 + $0x4] sm:$0xf]  ;;  %v2421_v17 = vld [vmem:[%s2550_s9 + $0x18] sm:$0xff]  }
  0x15   : > { %2234 = vmatpush3.bf16.msra.mxu1 %v793_v10  ;;  %2173 = vmatprep.mubr.msk.bf16.mxu0 %vm2473_vm2, %v2472_v2  ;;  %v2422_v18 = vld [vmem:[%s2558_s12 + $0x18] sm:$0xff]   ;;  %v1985_v19 = vcombine.low %v572_v15, %v573_v16  ;;  %v2426_v20 = vld [vmem:[%s2550_s9 + $0x8] sm:$0xff]   ;;  %v2423_v24 = vld [vmem:[%s2550_s9 + $0x20] sm:$0xff]  }
  0x16   : > { %2195 = vmatprep.mubr.msk.bf16.mxu1 %vm2473_vm2, %v2472_v2  ;;  %2255 = vmatprep.subr.bf16.mxu0 %v2472_v2  ;;  %v2437_v22 = vld [vmem:[%s2550_s9 + $0x2c] ss:$0 sps:$4 sm:$0x11]   ;;  %v2600_v23 = vld [vmem:[%s2550_s9 + $0x24] sm:$0xff]   ;;  %v759_v25 = vld [vmem:[%s2550_s9] sm:$0xe] }
  0x17   : > { %2277 = vmatprep.subr.bf16.mxu1 %v2472_v2  ;;  %v617_v21 = vshll.u32 %v1985_v19, 16  ;;  %v2424_v26 = vld [vmem:[%s2558_s12 + $0x20] sm:$0xff]   ;;  %v615_v27 = vshrl.u32 %v1985_v19, 16  ;;  %v926_v28 = vrot.slane %v2600_v23, 1  ;;  %v928_v29 = vrot.slane %v2437_v22, 1  ;;  %v2428_v36 = vld [vmem:[%s2550_s9 + $0x10] sm:$0xff]  }
  0x18   : > { %v622_v31 = vshll.u32 %v2426_v20, 16  ;;  %v1997_v32 = vcombine.low %v759_v25, %v573_v16  ;;  %v767_v38 = vrot.slane %v2426_v20, 1  ;;  %v626_v42 = vshrl.u32 %v2426_v20, 16  ;;  %v2429_v49 = vld [vmem:[%s2550_s9 + $0x18] sm:$0xff]   ;;  %v2430_v57 = vld [vmem:[%s2550_s9 + $0x20] sm:$0xff]  }
  0x19   : > { %v619_v30 = vrot.slane %v617_v21, 1  ;;  %v2609_v33 = vsel %vm765_vm5, %v926_v28, %v928_v29  ;;  %v630_v43 = vshll.u32 %v2428_v36, 16  ;;  %v769_v50 = vrot.slane %v2428_v36, 1  ;;  %v2431_v1 = vld [vmem:[%s2550_s9 + $0x28] ss:$0 sps:$4 sm:$0x11]  }
  0x1a   : > { %v624_v35 = vrot.slane %v622_v31, 1  ;;  %v766_v37 = vrot.slane %v1997_v32, 1  ;;  %v634_v52 = vshrl.u32 %v2428_v36, 16  ;;  %v638_v53 = vshll.u32 %v2429_v49, 16  ;;  %v878_v4 = vld [vmem:[%s2550_s9 + $0x4] sm:$0xe] }
  0x1b   : > { %2174 = vmatmul.mubr.msk.bf16.gmra.mrb[4].mxu0 %vm361_vm3, %v2417_v11  ;;  %v620_v34 = vor.u32 %v619_v30, %v615_v27  ;;  %v632_v48 = vrot.slane %v630_v43, 1  ;;  %v770_v54 = vsel %vm765_vm5, %v767_v38, %v769_v50  ;;  %v771_v58 = vrot.slane %v2429_v49, 1  ;;  %v2657_v5 = vld [vmem:[%s2550_s9 + $0x8] sm:$0xf]  ;;  %v2663_v11 = vld [vmem:[%s2550_s9 + $0xc] sm:$0xff]  }
  0x1c   : > { %2196 = vmatmul.mubr.msk.bf16.gmra.mrb[4].mxu1 %vm479_vm4, %v2418_v12  ;;  %2177 = vmatprep.mubr.msk.bf16.mxu0 %vm2473_vm2, %v2472_v2  ;;  %v768_v44 = vsel %vm765_vm5, %v766_v37, %v767_v38  ;;  %v628_v47 = vor.u32 %v626_v42, %v624_v35  ;;  %v640_v56 = vrot.slane %v638_v53, 1  ;;  %v642_v60 = vshrl.u32 %v2429_v49, 16  ;;  %v2029_v36 = vld [vmem:[%s2939_s1 + $0x18] sm:$0xf]  ;;  %v2697_v42 = vld [vmem:[%s2550_s9 + $0x1c] sm:$0xff]  }
  0x1d   : > { %2199 = vmatprep.mubr.msk.bf16.mxu1 %vm2473_vm2, %v2472_v2  ;;  %v625_v41 = vsel %vm613_vm6, %v620_v34, %v624_v35  ;;  %v636_v55 = vor.u32 %v634_v52, %v632_v48  ;;  %v646_v61 = vshll.u32 %v2430_v57, 16  ;;  %v772_v62 = vsel %vm765_vm5, %v769_v50, %v771_v58  ;;  %v2022_v35 = vld [vmem:[%s2939_s1 + $0x14] sm:$0xf] }
  0x1e   : > { %v633_v51 = vsel %vm613_vm6, %v628_v47, %v632_v48  ;;  %v644_v63 = vor.u32 %v642_v60, %v640_v56  ;;  %v773_v3 = vrot.slane %v2430_v57, 1  ;;  %v650_v7 = vshrl.u32 %v2430_v57, 16  ;;  %v2725_v60 = vld [vmem:[%s2550_s9 + $0x2c] ss:$0 sps:$4 sm:$0x33]  }
  0x1f   : > { %v641_v59 = vsel %vm613_vm6, %v636_v55, %v640_v56  ;;  %v648_v0 = vrot.slane %v646_v61, 1  ;;  %v654_v8 = vshll.u32 %v2431_v1, 16  ;;  %v2004_v10 = vcombine.low %v878_v4, %v2657_v5 }
  0x20   : > { %v774_v9 = vsel %vm765_vm5, %v771_v58, %v773_v3  ;;  %v920_v29 = vrot.slane %v2663_v11, 1  ;;  %v1226_v39 = vsel %vm377_vm0, %v2022_v35, 0  ;;  %v1379_v43 = vsel %vm377_vm0, %v2029_v36, 0 }
  0x21   : > { %v649_v6 = vsel %vm613_vm6, %v644_v63, %v648_v0  ;;  %v652_v12 = vor.u32 %v650_v7, %v648_v0  ;;  %v1039_v15 = vshrl.u32 %v2004_v10, 16  ;;  %v1042_v16 = vshll.u32 %v2004_v10, 16  ;;  %v1192_v7 = vld [vmem:[%s2550_s9 + $0x4] sm:$0xc] }
  0x22   : > { %v919_v27 = vrot.slane %v2004_v10, 1  ;;  %v1068_v47 = vshll.u32 %v2697_v42, 16  ;;  %v924_v52 = vrot.slane %v2697_v42, 1  ;;  %v1077_v55 = vshll.u32 %v2600_v23, 16 }
  0x23   : > { %2178 = vmatmul.mubr.msk.bf16.gmra.mrb[8].mxu0 %vm361_vm3, %v2419_v13  ;;  %v656_v13 = vrot.slane %v654_v8, 1  ;;  %v1041_v21 = vrot.slane %v1039_v15, 1  ;;  %v1044_v22 = vrot.slane %v1042_v16, 2  ;;  %v1086_v63 = vshll.u32 %v2725_v60, 16  ;;  %v1311_v8 = vld [vmem:[%s2550_s9 + $0x8] sm:$0xc] }
  0x24   : > { %2200 = vmatmul.mubr.msk.bf16.gmra.mrb[8].mxu1 %vm479_vm4, %v2420_v14  ;;  %2181 = vmatprep.mubr.msk.bf16.mxu0 %vm2473_vm2, %v2472_v2  ;;  %v775_v14 = vrot.slane %v2431_v1, 1  ;;  %v921_v37 = vsel %vm765_vm5, %v919_v27, %v920_v29  ;;  %v927_v0 = vsel %vm765_vm5, %v924_v52, %v926_v28  ;;  %v2023_v28 = vcombine.low %v1192_v7, %v2657_v5 }
  0x25   : > { %2203 = vmatprep.mubr.msk.bf16.mxu1 %vm2473_vm2, %v2472_v2  ;;  %v657_v19 = vsel %vm613_vm6, %v652_v12, %v656_v13  ;;  %v1045_v30 = vor.u32 %v1044_v22, %v1041_v21  ;;  %v1088_v4 = vrot.slane %v1086_v63, 2  ;;  %v2754_v13 = vld [vmem:[%s2550_s9 + $0x10] sm:$0xff]   ;;  %v1200_v15 = vrot.slane %v2663_v11, 2 }
  0x26   : > { %v776_v20 = vsel %vm765_vm5, %v773_v3, %v775_v14  ;;  %v1199_v14 = vrot.slane %v2023_v28, 2  ;;  %v1353_v16 = vrot.slane %v2754_v13, 2  ;;  %v1206_v35 = vrot.slane %v2600_v23, 2 }
  0x2b   : > { %2182 = vmatmul.mubr.msk.bf16.gmra.mrb[12].mxu0 %vm361_vm3, %v2421_v17  ;;  %v1047_v17 = vshrl.u32 %v2663_v11, 16 }
  0x2c   : > { %2204 = vmatmul.mubr.msk.bf16.gmra.mrb[12].mxu1 %vm479_vm4, %v2422_v18  ;;  %2185 = vmatprep.mubr.msk.bf16.mxu0 %vm2473_vm2, %v2472_v2  ;;  %v1050_v18 = vshll.u32 %v2663_v11, 16 }
  0x2d   : > { %2207 = vmatprep.mubr.msk.bf16.mxu1 %vm2473_vm2, %v2472_v2 }
  0x2e   : > { %v1052_v25 = vrot.slane %v1050_v18, 2  ;;  %v1201_v18 = vsel %vm1198_vm8, %v1199_v14, %v1200_v15 }
  0x33   : > { %2186 = vmatmul.mubr.msk.bf16.gmra.mrb[16].mxu0 %vm361_vm3, %v2423_v24  ;;  %v1049_v24 = vrot.slane %v1047_v17, 1  ;;  %v2041_v17 = vld [vmem:[%s2939_s1 + $0x1c] sm:$0xf] }
  0x34   : > { %2208 = vmatmul.mubr.msk.bf16.gmra.mrb[16].mxu1 %vm479_vm4, %v2424_v26  ;;  %2213 = vmatprep.mubr.msk.bf16.mxu0 %vm2473_vm2, %v2472_v2  ;;  %v2676_v26 = vld [vmem:[%s2550_s9 + $0x14] sm:$0xff]  }
  0x35   : > { %2235 = vmatprep.mubr.msk.bf16.mxu1 %vm2473_vm2, %v2472_v2  ;;  %v1053_v31 = vor.u32 %v1052_v25, %v1049_v24  ;;  %v1056_v32 = vshrl.u32 %v2676_v26, 16  ;;  %v1059_v34 = vshll.u32 %v2676_v26, 16  ;;  %v1202_v22 = vrot.slane %v2676_v26, 2 }
  0x37   : > { %v1054_v38 = vsel %vm1037_vm7, %v1045_v30, %v1053_v31  ;;  %v1058_v40 = vrot.slane %v1056_v32, 1  ;;  %v1203_v25 = vsel %vm1198_vm8, %v1200_v15, %v1202_v22 }
  0x3b   : > { %2214 = vmatmul.mubr.msk.bf16.vlgmr.msra.gmra.mrb[20].mxu0 %vm361_vm3, %v625_v41  ;;  %v1061_v41 = vrot.slane %v1059_v34, 2  ;;  %v2802_v34 = vld [vmem:[%s2550_s9 + $0x28] sm:$0xff]  }
  0x3c   : > { %2236 = vmatmul.mubr.msk.bf16.vlgmr.msra.gmra.mrb[20].mxu1 %vm361_vm3, %v768_v44  ;;  %2256 = vmatpush3.bf16.msra.mxu0 %v946_v45  ;;  %v922_v44 = vrot.slane %v2676_v26, 1  ;;  %v1204_v26 = vrot.slane %v2697_v42, 2  ;;  %v1359_v36 = vrot.slane %v2802_v34, 2  ;;  %v1507_v28 = vshrl.u32 %v2802_v34, 16 }
  0x3d   : > { %2278 = vmatpush3.bf16.msra.mxu1 %v1107_v46  ;;  %2217 = vmatprep.mubr.msk.bf16.mxu0 %vm2473_vm2, %v2472_v2  ;;  %v1062_v45 = vor.u32 %v1061_v41, %v1058_v40  ;;  %v1065_v46 = vshrl.u32 %v2697_v42, 16  ;;  %v1208_v40 = vrot.slane %v2725_v60, 2  ;;  %v1480_v42 = vshrl.u32 %v2754_v13, 16 }
  0x3e   : > { %2239 = vmatprep.mubr.msk.bf16.mxu1 %vm2473_vm2, %v2472_v2  ;;  %2299 = vmatprep.subr.bf16.mxu0 %v2472_v2  ;;  %v923_v48 = vsel %vm765_vm5, %v920_v29, %v922_v44  ;;  %v925_v56 = vsel %vm765_vm5, %v922_v44, %v924_v52  ;;  %v2789_v29 = vld [vmem:[%s2550_s9 + $0x20] sm:$0xff]   ;;  %v1509_v14 = vrot.slane %v1507_v28, 2 }
  0x3f   : > { %2321 = vmatprep.subr.bf16.mxu1 %v2472_v2  ;;  %v1063_v49 = vsel %vm1037_vm7, %v1053_v31, %v1062_v45  ;;  %v1067_v50 = vrot.slane %v1065_v46, 1  ;;  %v1357_v30 = vrot.slane %v2789_v29, 2  ;;  %v1205_v31 = vsel %vm1198_vm8, %v1202_v22, %v1204_v26 }
  0x40   : > { %v1209_v46 = vsel %vm1198_vm8, %v1206_v35, %v1208_v40 }
  0x43   : > { %2218 = vmatmul.mubr.msk.bf16.gmra.mrb[24].mxu0 %vm361_vm3, %v633_v51  ;;  %v1070_v51 = vrot.slane %v1068_v47, 2 }
  0x44   : > { %2240 = vmatmul.mubr.msk.bf16.gmra.mrb[24].mxu1 %vm361_vm3, %v770_v54  ;;  %2221 = vmatprep.mubr.msk.bf16.mxu0 %vm2473_vm2, %v2472_v2  ;;  %v1074_v54 = vshrl.u32 %v2600_v23, 16 }
  0x45   : > { %2243 = vmatprep.mubr.msk.bf16.mxu1 %vm2473_vm2, %v2472_v2  ;;  %v1071_v53 = vor.u32 %v1070_v51, %v1067_v50 }
  0x46   : > { %v1076_v58 = vrot.slane %v1074_v54, 1 }
  0x47   : > { %v1072_v57 = vsel %vm1037_vm7, %v1062_v45, %v1071_v53  ;;  %v1625_v45 = vld [vmem:[%s2550_s9 + $0x8] sm:$0x8] }
  0x4b   : > { %2222 = vmatmul.mubr.msk.bf16.gmra.mrb[28].mxu0 %vm361_vm3, %v641_v59  ;;  %v1079_v59 = vrot.slane %v1077_v55, 2 }
  0x4c   : > { %2244 = vmatmul.mubr.msk.bf16.gmra.mrb[28].mxu1 %vm361_vm3, %v772_v62  ;;  %2225 = vmatprep.mubr.msk.bf16.mxu0 %vm2473_vm2, %v2472_v2  ;;  %v1083_v62 = vshrl.u32 %v2725_v60, 16 }
  0x4d   : > { %2247 = vmatprep.mubr.msk.bf16.mxu1 %vm2473_vm2, %v2472_v2  ;;  %v1080_v61 = vor.u32 %v1079_v59, %v1076_v58  ;;  %v1633_v58 = vrot.slane %v2754_v13, 3 }
  0x4e   : > { %v1085_v3 = vrot.slane %v1083_v62, 1 }
  0x4f   : > { %v1081_v1 = vsel %vm1037_vm7, %v1071_v53, %v1080_v61 }
  0x53   : > { %2226 = vmatmul.mubr.msk.bf16.gmra.mrb[32].mxu0 %vm361_vm3, %v649_v6  ;;  %v1089_v6 = vor.u32 %v1088_v4, %v1085_v3 }
  0x54   : > { %2248 = vmatmul.mubr.msk.bf16.gmra.mrb[32].mxu1 %vm361_vm3, %v774_v9  ;;  %2229 = vmatprep.mubr.msk.bf16.mxu0 %vm2473_vm2, %v2472_v2  ;;  %v2748_v9 = vld [vmem:[%s2550_s9 + $0xc] sm:$0xf] }
  0x55   : > { %2251 = vmatprep.mubr.msk.bf16.mxu1 %vm2473_vm2, %v2472_v2  ;;  %v1090_v10 = vsel %vm1037_vm7, %v1080_v61, %v1089_v6  ;;  %v2030_v12 = vcombine.low %v1311_v8, %v2748_v9  ;;  %v2049_v52 = vcombine.low %v1625_v45, %v2748_v9 }
  0x57   : > { %v1352_v5 = vrot.slane %v2030_v12, 2  ;;  %v1472_v23 = vshrl.u32 %v2030_v12, 16  ;;  %v1475_v41 = vshll.u32 %v2030_v12, 16  ;;  %v1637_v12 = vrot.slane %v2789_v29, 3 }
  0x59   : > { %v1354_v11 = vsel %vm1198_vm8, %v1352_v5, %v1353_v16  ;;  %v1474_v47 = vrot.slane %v1472_v23, 2  ;;  %v2447_v5 = vld [vmem:[%s2550_s9 + $0x30] ss:$0 sps:$4 sm:$0x77]  }
  0x5b   : > { %2230 = vmatmul.mubr.msk.bf16.gmra.mrb[36].mxu0 %vm361_vm3, %v657_v19  ;;  %v1540_v19 = vsel %vm377_vm0, %v2041_v17, 0 }
  0x5c   : > { %2252 = vmatmul.mubr.msk.bf16.gmra.mrb[36].mxu1 %vm361_vm3, %v776_v20  ;;  %2257 = vmatprep.mubr.msk.bf16.mxu0 %vm2473_vm2, %v2472_v2  ;;  %v2775_v20 = vld [vmem:[%s2550_s9 + $0x18] sm:$0xff]  }
  0x5d   : > { %2279 = vmatprep.mubr.msk.bf16.mxu1 %vm2473_vm2, %v2472_v2  ;;  %v1355_v24 = vrot.slane %v2775_v20, 2  ;;  %v1489_v55 = vshrl.u32 %v2775_v20, 16  ;;  %v1635_v3 = vrot.slane %v2775_v20, 3 }
  0x5f   : > { %v1356_v27 = vsel %vm1198_vm8, %v1353_v16, %v1355_v24  ;;  %v1358_v32 = vsel %vm1198_vm8, %v1355_v24, %v1357_v30  ;;  %v1491_v60 = vrot.slane %v1489_v55, 2  ;;  %v1636_v8 = vsel %vm1631_vm10, %v1633_v58, %v1635_v3 }
  0x60   : > { %v1638_v16 = vsel %vm1631_vm10, %v1635_v3, %v1637_v12 }
  0x63   : > { %2258 = vmatmul.mubr.msk.bf16.vlgmr.msra.gmra.mrb[40].mxu0 %vm361_vm3, %v921_v37  ;;  %v1207_v37 = vsel %vm1198_vm8, %v1204_v26, %v1206_v35 }
  0x64   : > { %2280 = vmatmul.mubr.msk.bf16.vlgmr.msra.gmra.mrb[40].mxu1 %vm361_vm3, %v1054_v38  ;;  %2300 = vmatpush3.bf16.msra.mxu0 %v1226_v39  ;;  %v1360_v38 = vsel %vm1198_vm8, %v1357_v30, %v1359_v36  ;;  %v2445_v39 = vld [vmem:[%s2550_s9 + $0x30] ss:$0 sps:$4 sm:$0x33]   ;;  %s2907_s9 = scalar_lea.vmem %s2943_s5, %s2388_s29 }
  0x65   : > { %2322 = vmatpush3.bf16.msra.mxu1 %v1379_v43  ;;  %2261 = vmatprep.mubr.msk.bf16.mxu0 %vm2473_vm2, %v2472_v2  ;;  %v1483_v43 = vshll.u32 %v2754_v13, 16  ;;  %v1361_v44 = vrot.slane %v2445_v39, 2 }
  0x66   : > { %2283 = vmatprep.mubr.msk.bf16.mxu1 %vm2473_vm2, %v2472_v2  ;;  %2343 = vmatprep.subr.bf16.mxu0 %v2472_v2 }
  0x67   : > { %2365 = vmatprep.subr.bf16.mxu1 %v2472_v2  ;;  %v1485_v50 = vrot.slane %v1483_v43, 3  ;;  %v1362_v51 = vsel %vm1198_vm8, %v1359_v36, %v1361_v44 }
  0x6b   : > { %2262 = vmatmul.mubr.msk.bf16.gmra.mrb[44].mxu0 %vm361_vm3, %v923_v48  ;;  %v1477_v48 = vrot.slane %v1475_v41, 3 }
  0x6c   : > { %2284 = vmatmul.mubr.msk.bf16.gmra.mrb[44].mxu1 %vm361_vm3, %v1063_v49  ;;  %2265 = vmatprep.mubr.msk.bf16.mxu0 %vm2473_vm2, %v2472_v2  ;;  %v1482_v49 = vrot.slane %v1480_v42, 2 }
  0x6d   : > { %2287 = vmatprep.mubr.msk.bf16.mxu1 %vm2473_vm2, %v2472_v2  ;;  %v1478_v53 = vor.u32 %v1477_v48, %v1474_v47 }
  0x6e   : > { %v1486_v54 = vor.u32 %v1485_v50, %v1482_v49 }
  0x70   : > { %v1487_v59 = vsel %vm1470_vm9, %v1478_v53, %v1486_v54 }
  0x73   : > { %2266 = vmatmul.mubr.msk.bf16.gmra.mrb[48].mxu0 %vm361_vm3, %v925_v56  ;;  %v1492_v56 = vshll.u32 %v2775_v20, 16 }
  0x74   : > { %2288 = vmatmul.mubr.msk.bf16.gmra.mrb[48].mxu1 %vm361_vm3, %v1072_v57  ;;  %2269 = vmatprep.mubr.msk.bf16.mxu0 %vm2473_vm2, %v2472_v2  ;;  %v1632_v57 = vrot.slane %v2049_v52, 3 }
  0x75   : > { %2291 = vmatprep.mubr.msk.bf16.mxu1 %vm2473_vm2, %v2472_v2  ;;  %v1494_v61 = vrot.slane %v1492_v56, 3 }
  0x76   : > { %v1634_v62 = vsel %vm1631_vm10, %v1632_v57, %v1633_v58 }
  0x77   : > { %v1495_v63 = vor.u32 %v1494_v61, %v1491_v60 }
  0x79   : > { %v1496_v4 = vsel %vm1470_vm9, %v1486_v54, %v1495_v63 }
  0x7b   : > { %2270 = vmatmul.mubr.msk.bf16.gmra.mrb[52].mxu0 %vm361_vm3, %v927_v0  ;;  %v1498_v0 = vshrl.u32 %v2789_v29, 16 }
  0x7c   : > { %2292 = vmatmul.mubr.msk.bf16.gmra.mrb[52].mxu1 %vm361_vm3, %v1081_v1  ;;  %2273 = vmatprep.mubr.msk.bf16.mxu0 %vm2473_vm2, %v2472_v2  ;;  %v1501_v1 = vshll.u32 %v2789_v29, 16 }
  0x7d   : > { %2295 = vmatprep.mubr.msk.bf16.mxu1 %vm2473_vm2, %v2472_v2  ;;  %v1500_v6 = vrot.slane %v1498_v0, 2 }
  0x7e   : > { %v1503_v7 = vrot.slane %v1501_v1, 3 }
  0x80   : > { %v1504_v9 = vor.u32 %v1503_v7, %v1500_v6 }
  0x82   : > { %v1505_v13 = vsel %vm1470_vm9, %v1495_v63, %v1504_v9 }
  0x83   : > { %2274 = vmatmul.mubr.msk.bf16.gmra.mrb[56].mxu0 %vm361_vm3, %v2609_v33  ;;  %v2048_v33 = vld [vmem:[%s2939_s1 + $0x20] sm:$0xf] }
  0x84   : > { %2296 = vmatmul.mubr.msk.bf16.gmra.mrb[56].mxu1 %vm361_vm3, %v1090_v10  ;;  %2301 = vmatprep.mubr.msk.bf16.mxu0 %vm2473_vm2, %v2472_v2  ;;  %v1659_v21 = vsel %vm377_vm0, %v2048_v33, 0  ;;  %v1510_v10 = vshll.u32 %v2802_v34, 16  ;;  %v1516_v33 = vshrl.u32 %v2447_v5, 16 }
  0x85   : > { %2323 = vmatprep.mubr.msk.bf16.mxu1 %vm2473_vm2, %v2472_v2 }
  0x86   : > { %v1512_v15 = vrot.slane %v1510_v10, 3  ;;  %v1518_v20 = vrot.slane %v1516_v33, 2 }
  0x88   : > { %v1513_v17 = vor.u32 %v1512_v15, %v1509_v14 }
  0x8b   : > { %2302 = vmatmul.mubr.msk.bf16.vlgmr.msra.gmra.mrb[60].mxu0 %vm361_vm3, %v1201_v18  ;;  %v1519_v18 = vshll.u32 %v2447_v5, 16 }
  0x8c   : > { %2324 = vmatmul.mubr.msk.bf16.vlgmr.msra.gmra.mrb[60].mxu1 %vm361_vm3, %v1354_v11  ;;  %2344 = vmatpush3.bf16.msra.mxu0 %v1540_v19  ;;  %v1639_v11 = vrot.slane %v2802_v34, 3  ;;  %v1514_v19 = vsel %vm1470_vm9, %v1504_v9, %v1513_v17 }
  0x8d   : > { %2366 = vmatpush3.bf16.msra.mxu1 %v1659_v21  ;;  %2305 = vmatprep.mubr.msk.bf16.mxu0 %vm2473_vm2, %v2472_v2  ;;  %v1521_v21 = vrot.slane %v1519_v18, 3 }
  0x8e   : > { %2327 = vmatprep.mubr.msk.bf16.mxu1 %vm2473_vm2, %v2472_v2  ;;  %v1640_v22 = vsel %vm1631_vm10, %v1637_v12, %v1639_v11 }
  0x8f   : > { %v1522_v24 = vor.u32 %v1521_v21, %v1518_v20 }
  0x93   : > { %2306 = vmatmul.mubr.msk.bf16.gmra.mrb[64].mxu0 %vm361_vm3, %v1203_v25  ;;  %v1641_v25 = vrot.slane %v2447_v5, 3 }
  0x94   : > { %2328 = vmatmul.mubr.msk.bf16.gmra.mrb[64].mxu1 %vm361_vm3, %v1356_v27  ;;  %2309 = vmatprep.mubr.msk.bf16.mxu0 %vm2473_vm2, %v2472_v2  ;;  %v1523_v27 = vsel %vm1470_vm9, %v1513_v17, %v1522_v24 }
  0x95   : > { %2331 = vmatprep.mubr.msk.bf16.mxu1 %vm2473_vm2, %v2472_v2  ;;  %v1642_v29 = vsel %vm1631_vm10, %v1639_v11, %v1641_v25 }
  0x9b   : > { %2310 = vmatmul.mubr.msk.bf16.gmra.mrb[68].mxu0 %vm361_vm3, %v1205_v31 }
  0x9c   : > { %2332 = vmatmul.mubr.msk.bf16.gmra.mrb[68].mxu1 %vm361_vm3, %v1358_v32  ;;  %2313 = vmatprep.mubr.msk.bf16.mxu0 %vm2473_vm2, %v2472_v2 }
  0x9d   : > { %2335 = vmatprep.mubr.msk.bf16.mxu1 %vm2473_vm2, %v2472_v2 }
  0xa3   : > { %2314 = vmatmul.mubr.msk.bf16.gmra.mrb[72].mxu0 %vm361_vm3, %v1207_v37 }
  0xa4   : > { %2336 = vmatmul.mubr.msk.bf16.gmra.mrb[72].mxu1 %vm361_vm3, %v1360_v38  ;;  %2317 = vmatprep.mubr.msk.bf16.mxu0 %vm2473_vm2, %v2472_v2 }
  0xa5   : > { %2339 = vmatprep.mubr.msk.bf16.mxu1 %vm2473_vm2, %v2472_v2 }
  0xab   : > { %2318 = vmatmul.mubr.msk.bf16.gmra.mrb[76].mxu0 %vm361_vm3, %v1209_v46 }
  0xac   : > { %2340 = vmatmul.mubr.msk.bf16.gmra.mrb[76].mxu1 %vm361_vm3, %v1362_v51  ;;  %2345 = vmatprep.mubr.msk.bf16.mxu0 %vm2473_vm2, %v2472_v2 }
  0xad   : > { %2367 = vmatprep.mubr.msk.bf16.mxu1 %vm2473_vm2, %v2472_v2 }
  0xb3   : > { %2346 = vmatmul.mubr.msk.bf16.vlgmr.msra.gmra.mrb[80].mxu0 %vm361_vm3, %v1487_v59 }
  0xb4   : > { %2368 = vmatmul.mubr.msk.bf16.vlgmr.msra.gmra.mrb[80].mxu1 %vm361_vm3, %v1634_v62  ;;  %2349 = vmatprep.mubr.msk.bf16.mxu0 %vm2473_vm2, %v2472_v2 }
  0xb5   : > { %2371 = vmatprep.mubr.msk.bf16.mxu1 %vm2473_vm2, %v2472_v2 }
  0xbb   : > { %2350 = vmatmul.mubr.msk.bf16.gmra.mrb[84].mxu0 %vm361_vm3, %v1496_v4 }
  0xbc   : > { %2372 = vmatmul.mubr.msk.bf16.gmra.mrb[84].mxu1 %vm361_vm3, %v1636_v8  ;;  %2353 = vmatprep.mubr.msk.bf16.mxu0 %vm2473_vm2, %v2472_v2 }
  0xbd   : > { %2375 = vmatprep.mubr.msk.bf16.mxu1 %vm2473_vm2, %v2472_v2 }
  0xc3   : > { %2354 = vmatmul.mubr.msk.bf16.gmra.mrb[88].mxu0 %vm361_vm3, %v1505_v13 }
  0xc4   : > { %2376 = vmatmul.mubr.msk.bf16.gmra.mrb[88].mxu1 %vm361_vm3, %v1638_v16  ;;  %2357 = vmatprep.mubr.msk.bf16.mxu0 %vm2473_vm2, %v2472_v2 }
  0xc5   : > { %2379 = vmatprep.mubr.msk.bf16.mxu1 %vm2473_vm2, %v2472_v2 }
  0xcb   : > { %2358 = vmatmul.mubr.msk.bf16.gmra.mrb[92].mxu0 %vm361_vm3, %v1514_v19 }
  0xcc   : > { %2380 = vmatmul.mubr.msk.bf16.gmra.mrb[92].mxu1 %vm361_vm3, %v1640_v22  ;;  %2361 = vmatprep.mubr.msk.bf16.mxu0 %vm2473_vm2, %v2472_v2 }
  0xcd   : > { %2383 = vmatprep.mubr.msk.bf16.mxu1 %vm2473_vm2, %v2472_v2 }
  0xd3   : > { %2362 = vmatmul.mubr.msk.bf16.gmra.mrb[96].mxu0 %vm361_vm3, %v1523_v27 }
  0xd4   : > { %2384 = vmatmul.mubr.msk.bf16.gmra.mrb[96].mxu1 %vm361_vm3, %v1642_v29 }
  0xe6   : > { %v415_v26 = vpop.f32.mrb[0].mxu0 }
  0xe7   : > { %v533_v30 = vpop.f32.mrb[0].mxu1  ;;  %v2171_v31 = vpop.f32.mrb[1].mxu0 }
  0xe8   : > { %v534_v32 = vadd.f32 %v533_v30, %v415_v26  ;;  %v2193_v34 = vpop.f32.mrb[1].mxu1  ;;  %v418_v35 = vpop.f32.mrb[2].mxu0 }
  0xe9   : > { %v536_v36 = vpop.f32.mrb[2].mxu1  ;;  %v2172_v37 = vpop.f32.mrb[3].mxu0 }
  0xea   : > { %v537_v38 = vadd.f32 %v536_v36, %v418_v35  ;;  %v2194_v39 = vpop.f32.mrb[3].mxu1 }
  0xee   : > { %v423_v2 = vpop.f32.mrb[4].mxu0 }
  0xef   : > { %v541_v40 = vpop.f32.mrb[4].mxu1  ;;  %v2175_v23 = vpop.f32.mrb[5].mxu0 }
  0xf0   : > { %v542_v41 = vadd.f32 %v541_v40, %v423_v2  ;;  %v2197_v42 = vpop.f32.mrb[5].mxu1  ;;  %v426_v43 = vpop.f32.mrb[6].mxu0 }
  0xf1   : > { %v544_v44 = vpop.f32.mrb[6].mxu1  ;;  %v2176_v45 = vpop.f32.mrb[7].mxu0 }
  0xf2   : > { %v545_v46 = vadd.f32 %v544_v44, %v426_v43  ;;  %v2198_v47 = vpop.f32.mrb[7].mxu1 }
  0xf6   : > { %v431_v48 = vpop.f32.mrb[8].mxu0 }
  0xf7   : > { %v549_v49 = vpop.f32.mrb[8].mxu1  ;;  %v2179_v50 = vpop.f32.mrb[9].mxu0 }
  0xf8   : > { %v550_v51 = vadd.f32 %v549_v49, %v431_v48  ;;  %v2201_v52 = vpop.f32.mrb[9].mxu1  ;;  %v434_v53 = vpop.f32.mrb[10].mxu0 }
  0xf9   : > { %v552_v54 = vpop.f32.mrb[10].mxu1  ;;  %v2180_v55 = vpop.f32.mrb[11].mxu0 }
  0xfa   : > { %v553_v56 = vadd.f32 %v552_v54, %v434_v53  ;;  %v2202_v57 = vpop.f32.mrb[11].mxu1 }
  0xfe   : > { %v439_v58 = vpop.f32.mrb[12].mxu0 }
  0xff   : > { %v557_v59 = vpop.f32.mrb[12].mxu1  ;;  %v2183_v60 = vpop.f32.mrb[13].mxu0 }
 0x100   : > { %v558_v61 = vadd.f32 %v557_v59, %v439_v58  ;;  %v2205_v62 = vpop.f32.mrb[13].mxu1  ;;  %v442_v63 = vpop.f32.mrb[14].mxu0 }
 0x101   : > { %v560_v0 = vpop.f32.mrb[14].mxu1  ;;  %v2184_v1 = vpop.f32.mrb[15].mxu0 }
 0x102   : > { %v561_v3 = vadd.f32 %v560_v0, %v442_v63  ;;  %v2206_v4 = vpop.f32.mrb[15].mxu1 }
 0x106   : > { %v447_v6 = vpop.f32.mrb[16].mxu0 }
 0x107   : > { %v565_v7 = vpop.f32.mrb[16].mxu1  ;;  %v2187_v8 = vpop.f32.mrb[17].mxu0 }
 0x108   : > { %v566_v9 = vadd.f32 %v565_v7, %v447_v6  ;;  %v2209_v28 = vpop.f32.mrb[17].mxu1  ;;  %v450_v10 = vpop.f32.mrb[18].mxu0 }
 0x109   : > { %v568_v12 = vpop.f32.mrb[18].mxu1  ;;  %v2188_v13 = vpop.f32.mrb[19].mxu0 }
 0x10a   : > { %v569_v14 = vadd.f32 %v568_v12, %v450_v10  ;;  %v2210_v15 = vpop.f32.mrb[19].mxu1 }
 0x10e   : > { %v710_v5 = vpop.f32.mrb[20].mxu0 }
 0x10f   : > { %v749_v16 = vadd.f32 %v710_v5, %v534_v32  ;;  %v829_v17 = vpop.f32.mrb[20].mxu1  ;;  %v2215_v33 = vpop.f32.mrb[21].mxu0 }
 0x110   : > { %v2237_v18 = vpop.f32.mrb[21].mxu1  ;;  %v713_v11 = vpop.f32.mrb[22].mxu0 }
 0x111   : > { %v868_v19 = vadd.f32 %v829_v17, %v749_v16  ;;  %v750_v20 = vadd.f32 %v713_v11, %v537_v38  ;;  %v832_v21 = vpop.f32.mrb[22].mxu1  ;;  %v2216_v22 = vpop.f32.mrb[23].mxu0 }
 0x112   : > { %v2238_v24 = vpop.f32.mrb[23].mxu1 }
 0x113   : > { %v869_v25 = vadd.f32 %v832_v21, %v750_v20 }
 0x116   : > { %v718_v27 = vpop.f32.mrb[24].mxu0 }
 0x117   : > { %v751_v29 = vadd.f32 %v718_v27, %v542_v41  ;;  %v837_v26 = vpop.f32.mrb[24].mxu1  ;;  %v2219_v30 = vpop.f32.mrb[25].mxu0 }
 0x118   : > { %v2241_v31 = vpop.f32.mrb[25].mxu1  ;;  %v721_v34 = vpop.f32.mrb[26].mxu0 }
 0x119   : > { %v870_v35 = vadd.f32 %v837_v26, %v751_v29  ;;  %v752_v36 = vadd.f32 %v721_v34, %v545_v46  ;;  %v840_v37 = vpop.f32.mrb[26].mxu1  ;;  %v2220_v32 = vpop.f32.mrb[27].mxu0 }
 0x11a   : > { %v2242_v39 = vpop.f32.mrb[27].mxu1 }
 0x11b   : > { %v871_v2 = vadd.f32 %v840_v37, %v752_v36 }
 0x11e   : > { %v726_v40 = vpop.f32.mrb[28].mxu0 }
 0x11f   : > { %v753_v23 = vadd.f32 %v726_v40, %v550_v51  ;;  %v845_v42 = vpop.f32.mrb[28].mxu1  ;;  %v2223_v38 = vpop.f32.mrb[29].mxu0 }
 0x120   : > { %v2245_v43 = vpop.f32.mrb[29].mxu1  ;;  %v729_v44 = vpop.f32.mrb[30].mxu0 }
 0x121   : > { %v872_v45 = vadd.f32 %v845_v42, %v753_v23  ;;  %v754_v47 = vadd.f32 %v729_v44, %v553_v56  ;;  %v848_v48 = vpop.f32.mrb[30].mxu1  ;;  %v2224_v41 = vpop.f32.mrb[31].mxu0 }
 0x122   : > { %v2246_v49 = vpop.f32.mrb[31].mxu1 }
 0x123   : > { %v873_v50 = vadd.f32 %v848_v48, %v754_v47 }
 0x126   : > { %v734_v52 = vpop.f32.mrb[32].mxu0 }
 0x127   : > { %v755_v53 = vadd.f32 %v734_v52, %v558_v61  ;;  %v853_v54 = vpop.f32.mrb[32].mxu1  ;;  %v2227_v46 = vpop.f32.mrb[33].mxu0 }
 0x128   : > { %v2249_v55 = vpop.f32.mrb[33].mxu1  ;;  %v737_v57 = vpop.f32.mrb[34].mxu0 }
 0x129   : > { %v874_v58 = vadd.f32 %v853_v54, %v755_v53  ;;  %v756_v59 = vadd.f32 %v737_v57, %v561_v3  ;;  %v856_v60 = vpop.f32.mrb[34].mxu1  ;;  %v2228_v51 = vpop.f32.mrb[35].mxu0 }
 0x12a   : > { %v2250_v62 = vpop.f32.mrb[35].mxu1 }
 0x12b   : > { %v875_v63 = vadd.f32 %v856_v60, %v756_v59 }
 0x12e   : > { %v742_v0 = vpop.f32.mrb[36].mxu0 }
 0x12f   : > { %v757_v1 = vadd.f32 %v742_v0, %v566_v9  ;;  %v861_v4 = vpop.f32.mrb[36].mxu1  ;;  %v2231_v56 = vpop.f32.mrb[37].mxu0 }
 0x130   : > { %v2253_v6 = vpop.f32.mrb[37].mxu1  ;;  %v745_v7 = vpop.f32.mrb[38].mxu0 }
 0x131   : > { %v876_v8 = vadd.f32 %v861_v4, %v757_v1  ;;  %v758_v28 = vadd.f32 %v745_v7, %v569_v14  ;;  %v864_v10 = vpop.f32.mrb[38].mxu1  ;;  %v2232_v61 = vpop.f32.mrb[39].mxu0 }
 0x132   : > { %v2254_v12 = vpop.f32.mrb[39].mxu1 }
 0x133   : > { %v877_v13 = vadd.f32 %v864_v10, %v758_v28 }
 0x136   : > { %v982_v15 = vpop.f32.mrb[40].mxu0 }
 0x137   : > { %v1021_v5 = vadd.f32 %v982_v15, %v868_v19  ;;  %v1143_v16 = vpop.f32.mrb[40].mxu1  ;;  %v2259_v3 = vpop.f32.mrb[41].mxu0 }
 0x138   : > { %v2281_v17 = vpop.f32.mrb[41].mxu1  ;;  %v985_v33 = vpop.f32.mrb[42].mxu0 }
 0x139   : > { %v1182_v18 = vadd.f32 %v1143_v16, %v1021_v5  ;;  %v1022_v11 = vadd.f32 %v985_v33, %v869_v25  ;;  %v1146_v20 = vpop.f32.mrb[42].mxu1  ;;  %v2260_v9 = vpop.f32.mrb[43].mxu0 }
 0x13a   : > { %v2282_v21 = vpop.f32.mrb[43].mxu1 }
 0x13b   : > { %v1183_v22 = vadd.f32 %v1146_v20, %v1022_v11 }
 0x13e   : > { %v990_v24 = vpop.f32.mrb[44].mxu0 }
 0x13f   : > { %v1023_v27 = vadd.f32 %v990_v24, %v870_v35  ;;  %v1151_v29 = vpop.f32.mrb[44].mxu1  ;;  %v2263_v14 = vpop.f32.mrb[45].mxu0 }
 0x140   : > { %v2285_v26 = vpop.f32.mrb[45].mxu1  ;;  %v993_v30 = vpop.f32.mrb[46].mxu0 }
 0x141   : > { %v1184_v31 = vadd.f32 %v1151_v29, %v1023_v27  ;;  %v1024_v34 = vadd.f32 %v993_v30, %v871_v2  ;;  %v1154_v36 = vpop.f32.mrb[46].mxu1  ;;  %v2264_v19 = vpop.f32.mrb[47].mxu0 }
 0x142   : > { %v2286_v37 = vpop.f32.mrb[47].mxu1 }
 0x143   : > { %v1185_v32 = vadd.f32 %v1154_v36, %v1024_v34 }
 0x146   : > { %v998_v39 = vpop.f32.mrb[48].mxu0 }
 0x147   : > { %v1025_v40 = vadd.f32 %v998_v39, %v872_v45  ;;  %v1159_v23 = vpop.f32.mrb[48].mxu1  ;;  %v2267_v25 = vpop.f32.mrb[49].mxu0 }
 0x148   : > { %v2289_v42 = vpop.f32.mrb[49].mxu1  ;;  %v1001_v38 = vpop.f32.mrb[50].mxu0 }
 0x149   : > { %v1186_v43 = vadd.f32 %v1159_v23, %v1025_v40  ;;  %v1026_v44 = vadd.f32 %v1001_v38, %v873_v50  ;;  %v1162_v47 = vpop.f32.mrb[50].mxu1  ;;  %v2268_v35 = vpop.f32.mrb[51].mxu0 }
 0x14a   : > { %v2290_v48 = vpop.f32.mrb[51].mxu1 }
 0x14b   : > { %v1187_v41 = vadd.f32 %v1162_v47, %v1026_v44 }
 0x14e   : > { %v1006_v49 = vpop.f32.mrb[52].mxu0 }
 0x14f   : > { %v1027_v52 = vadd.f32 %v1006_v49, %v874_v58  ;;  %v1167_v53 = vpop.f32.mrb[52].mxu1  ;;  %v2271_v2 = vpop.f32.mrb[53].mxu0 }
 0x150   : > { %v2293_v54 = vpop.f32.mrb[53].mxu1  ;;  %v1009_v46 = vpop.f32.mrb[54].mxu0 }
 0x151   : > { %v1188_v55 = vadd.f32 %v1167_v53, %v1027_v52  ;;  %v1028_v57 = vadd.f32 %v1009_v46, %v875_v63  ;;  %v1170_v59 = vpop.f32.mrb[54].mxu1  ;;  %v2272_v45 = vpop.f32.mrb[55].mxu0 }
 0x152   : > { %v2294_v60 = vpop.f32.mrb[55].mxu1 }
 0x153   : > { %v1189_v51 = vadd.f32 %v1170_v59, %v1028_v57 }
 0x156   : > { %v1014_v62 = vpop.f32.mrb[56].mxu0 }
 0x157   : > { %v1029_v0 = vadd.f32 %v1014_v62, %v876_v8  ;;  %v1175_v1 = vpop.f32.mrb[56].mxu1  ;;  %v2275_v50 = vpop.f32.mrb[57].mxu0 }
 0x158   : > { %v2297_v4 = vpop.f32.mrb[57].mxu1  ;;  %v1017_v56 = vpop.f32.mrb[58].mxu0 }
 0x159   : > { %v1190_v6 = vadd.f32 %v1175_v1, %v1029_v0  ;;  %v1030_v7 = vadd.f32 %v1017_v56, %v877_v13  ;;  %v1178_v28 = vpop.f32.mrb[58].mxu1  ;;  %v2276_v58 = vpop.f32.mrb[59].mxu0 }
 0x15a   : > { %v2298_v10 = vpop.f32.mrb[59].mxu1 }
 0x15b   : > { %v1191_v61 = vadd.f32 %v1178_v28, %v1030_v7 }
 0x15e   : > { %v1262_v12 = vpop.f32.mrb[60].mxu0 }
 0x15f   : > { %v1301_v15 = vadd.f32 %v1262_v12, %v1182_v18  ;;  %v1415_v5 = vpop.f32.mrb[60].mxu1  ;;  %v2303_v63 = vpop.f32.mrb[61].mxu0 }
 0x160   : > { %v2325_v16 = vpop.f32.mrb[61].mxu1  ;;  %v1265_v3 = vpop.f32.mrb[62].mxu0 }
 0x161   : > { %v1454_v17 = vadd.f32 %v1415_v5, %v1301_v15  ;;  %v1302_v33 = vadd.f32 %v1265_v3, %v1183_v22  ;;  %v1418_v11 = vpop.f32.mrb[62].mxu1  ;;  %v2304_v8 = vpop.f32.mrb[63].mxu0 }
 0x162   : > { %v2326_v20 = vpop.f32.mrb[63].mxu1 }
 0x163   : > { %v1455_v9 = vadd.f32 %v1418_v11, %v1302_v33 }
 0x166   : > { %v1270_v21 = vpop.f32.mrb[64].mxu0 }
 0x167   : > { %v1303_v24 = vadd.f32 %v1270_v21, %v1184_v31  ;;  %v1423_v27 = vpop.f32.mrb[64].mxu1  ;;  %v2307_v13 = vpop.f32.mrb[65].mxu0 }
 0x168   : > { %v2329_v29 = vpop.f32.mrb[65].mxu1  ;;  %v1273_v14 = vpop.f32.mrb[66].mxu0 }
 0x169   : > { %v1456_v26 = vadd.f32 %v1423_v27, %v1303_v24  ;;  %v1304_v30 = vadd.f32 %v1273_v14, %v1185_v32  ;;  %v1426_v34 = vpop.f32.mrb[66].mxu1  ;;  %v2308_v18 = vpop.f32.mrb[67].mxu0 }
 0x16a   : > { %v2330_v36 = vpop.f32.mrb[67].mxu1 }
 0x16b   : > { %v2881_v19 = vadd.f32 %v1426_v34, %v1304_v30 }
 0x16e   : > { %v1278_v37 = vpop.f32.mrb[68].mxu0 }
 0x16f   : > { %v1305_v39 = vadd.f32 %v1278_v37, %v1186_v43  ;;  %v1431_v22 = vpop.f32.mrb[68].mxu1  ;;  %v2311_v40 = vpop.f32.mrb[69].mxu0 }
 0x170   : > { %v2333_v23 = vpop.f32.mrb[69].mxu1  ;;  %v1281_v25 = vpop.f32.mrb[70].mxu0 }
 0x171   : > { %v2883_v42 = vadd.f32 %v1431_v22, %v1305_v39  ;;  %v1306_v31 = vadd.f32 %v1281_v25, %v1187_v41  ;;  %v1434_v38 = vpop.f32.mrb[70].mxu1  ;;  %v2312_v44 = vpop.f32.mrb[71].mxu0 }
 0x172   : > { %v2334_v47 = vpop.f32.mrb[71].mxu1 }
 0x173   : > { %v2885_v35 = vadd.f32 %v1434_v38, %v1306_v31 }
 0x176   : > { %v1286_v32 = vpop.f32.mrb[72].mxu0 }
 0x177   : > { %v1307_v48 = vadd.f32 %v1286_v32, %v1188_v55  ;;  %v1439_v49 = vpop.f32.mrb[72].mxu1  ;;  %v2315_v52 = vpop.f32.mrb[73].mxu0 }
 0x178   : > { %v2337_v53 = vpop.f32.mrb[73].mxu1  ;;  %v1289_v2 = vpop.f32.mrb[74].mxu0 }
 0x179   : > { %v2887_v54 = vadd.f32 %v1439_v49, %v1307_v48  ;;  %v1308_v43 = vadd.f32 %v1289_v2, %v1189_v51  ;;  %v1442_v46 = vpop.f32.mrb[74].mxu1  ;;  %v2316_v57 = vpop.f32.mrb[75].mxu0 }
 0x17a   : > { %v2338_v59 = vpop.f32.mrb[75].mxu1 }
 0x17b   : > { %v2889_v45 = vadd.f32 %v1442_v46, %v1308_v43 }
 0x17e   : > { %v1294_v41 = vpop.f32.mrb[76].mxu0 }
 0x17f   : > { %v1309_v60 = vadd.f32 %v1294_v41, %v1190_v6  ;;  %v1447_v62 = vpop.f32.mrb[76].mxu1  ;;  %v2319_v0 = vpop.f32.mrb[77].mxu0  ;;  %v2898_v6 = vld [vmem:[%s2942_s4] ss:$0 sm:$0xff] }
 0x180   : > { %v2341_v1 = vpop.f32.mrb[77].mxu1  ;;  %v1297_v50 = vpop.f32.mrb[78].mxu0 }
 0x181   : > { %v2891_v4 = vadd.f32 %v1447_v62, %v1309_v60  ;;  %v1310_v55 = vadd.f32 %v1297_v50, %v1191_v61  ;;  %v1450_v56 = vpop.f32.mrb[78].mxu1  ;;  %v2320_v7 = vpop.f32.mrb[79].mxu0 }
 0x182   : > { %v2342_v28 = vpop.f32.mrb[79].mxu1 }
 0x183   : > { %v2893_v58 = vadd.f32 %v1450_v56, %v1310_v55 }
 0x186   : > { %v1576_v51 = vpop.f32.mrb[80].mxu0 }
 0x187   : > { %v1615_v10 = vadd.f32 %v1576_v51, %v1454_v17  ;;  %v1695_v12 = vpop.f32.mrb[80].mxu1  ;;  %v2347_v15 = vpop.f32.mrb[81].mxu0 }
 0x188   : > { %v2369_v5 = vpop.f32.mrb[81].mxu1  ;;  %v1579_v63 = vpop.f32.mrb[82].mxu0 }
 0x189   : > { %v1734_v16 = vadd.f32 %v1695_v12, %v1615_v10  ;;  %v1616_v3 = vadd.f32 %v1579_v63, %v1455_v9  ;;  %v1698_v61 = vpop.f32.mrb[82].mxu1  ;;  %v2348_v33 = vpop.f32.mrb[83].mxu0 }
 0x18a   : > { %v2370_v11 = vpop.f32.mrb[83].mxu1 }
 0x18b   : > { %v1751_v8 = vadd.f32 %v2898_v6, %v1734_v16  ;;  %v1735_v20 = vadd.f32 %v1698_v61, %v1616_v3 }
 0x18d   : > { %v1752_v17 = vadd.f32 %v2898_v6, %v1735_v20  ;;  %v1761_v24 = vmax.f32 %v1751_v8, 0.0 }
 0x18e   : > { %v1584_v21 = vpop.f32.mrb[84].mxu0 }
 0x18f   : > { %v1762_v27 = vmax.f32 %v1752_v17, 0.0  ;;  %v1617_v13 = vadd.f32 %v1584_v21, %v1456_v26  ;;  %v1703_v29 = vpop.f32.mrb[84].mxu1  ;;  %v2351_v14 = vpop.f32.mrb[85].mxu0 }
 0x190   : > { %v2373_v9 = vpop.f32.mrb[85].mxu1  ;;  %v1587_v30 = vpop.f32.mrb[86].mxu0 }
 0x191   : > { %v2081_v34 = vpack.c.bf16 %v1762_v27, %v1761_v24  ;;  %v1736_v18 = vadd.f32 %v1703_v29, %v1617_v13  ;;  %v1618_v36 = vadd.f32 %v1587_v30, %v2881_v19  ;;  %v1706_v37 = vpop.f32.mrb[86].mxu1  ;;  %v2352_v39 = vpop.f32.mrb[87].mxu0 }
 0x192   : > { %v2374_v22 = vpop.f32.mrb[87].mxu1 }
 0x193   : > { %2082 = vst [vmem:[%s2907_s9] sm:$0xff] %v2081_v34   ;;  %v1753_v26 = vadd.f32 %v2898_v6, %v1736_v18  ;;  %v1737_v40 = vadd.f32 %v1706_v37, %v1618_v36 }
 0x195   : > { %v1754_v23 = vadd.f32 %v2898_v6, %v1737_v40  ;;  %v1763_v31 = vmax.f32 %v1753_v26, 0.0 }
 0x196   : > { %v1592_v25 = vpop.f32.mrb[88].mxu0 }
 0x197   : > { %v1764_v38 = vmax.f32 %v1754_v23, 0.0  ;;  %v1619_v44 = vadd.f32 %v1592_v25, %v2883_v42  ;;  %v1711_v47 = vpop.f32.mrb[88].mxu1  ;;  %v2355_v32 = vpop.f32.mrb[89].mxu0 }
 0x198   : > { %v2377_v48 = vpop.f32.mrb[89].mxu1  ;;  %v1595_v49 = vpop.f32.mrb[90].mxu0 }
 0x199   : > { %v2086_v19 = vpack.c.bf16 %v1764_v38, %v1763_v31  ;;  %v1738_v52 = vadd.f32 %v1711_v47, %v1619_v44  ;;  %v1620_v53 = vadd.f32 %v1595_v49, %v2885_v35  ;;  %v1714_v2 = vpop.f32.mrb[90].mxu1  ;;  %v2356_v43 = vpop.f32.mrb[91].mxu0 }
 0x19a   : > { %v2378_v46 = vpop.f32.mrb[91].mxu1 }
 0x19b   : > { %2103 = vst [vmem:[%s2907_s9 + $0x8] sm:$0xff] %v2086_v19   ;;  %v1755_v57 = vadd.f32 %v2898_v6, %v1738_v52  ;;  %v1739_v59 = vadd.f32 %v1714_v2, %v1620_v53 }
 0x19d   : > { %v1756_v41 = vadd.f32 %v2898_v6, %v1739_v59  ;;  %v1765_v42 = vmax.f32 %v1755_v57, 0.0 }
 0x19e   : > { %v1600_v60 = vpop.f32.mrb[92].mxu0 }
 0x19f   : > { %v1766_v62 = vmax.f32 %v1756_v41, 0.0  ;;  %v1621_v0 = vadd.f32 %v1600_v60, %v2887_v54  ;;  %v1719_v1 = vpop.f32.mrb[92].mxu1  ;;  %v2359_v50 = vpop.f32.mrb[93].mxu0 }
 0x1a0   : > { %v2381_v55 = vpop.f32.mrb[93].mxu1  ;;  %v1603_v56 = vpop.f32.mrb[94].mxu0 }
 0x1a1   : > { %v2091_v35 = vpack.c.bf16 %v1766_v62, %v1765_v42  ;;  %v1740_v7 = vadd.f32 %v1719_v1, %v1621_v0  ;;  %v1622_v28 = vadd.f32 %v1603_v56, %v2889_v45  ;;  %v1722_v51 = vpop.f32.mrb[94].mxu1  ;;  %v2360_v10 = vpop.f32.mrb[95].mxu0 }
 0x1a2   : > { %v2382_v12 = vpop.f32.mrb[95].mxu1 }
 0x1a3   : > { %2104 = vst [vmem:[%s2907_s9 + $0x10] sm:$0xff] %v2091_v35   ;;  %v1757_v15 = vadd.f32 %v2898_v6, %v1740_v7  ;;  %v1741_v5 = vadd.f32 %v1722_v51, %v1622_v28 }
 0x1a5   : > { %v1758_v63 = vadd.f32 %v2898_v6, %v1741_v5  ;;  %v1767_v54 = vmax.f32 %v1757_v15, 0.0 }
 0x1a6   : > { %v1608_v16 = vpop.f32.mrb[96].mxu0 }
 0x1a7   : > { %v1768_v3 = vmax.f32 %v1758_v63, 0.0  ;;  %v1623_v61 = vadd.f32 %v1608_v16, %v2891_v4  ;;  %v1727_v33 = vpop.f32.mrb[96].mxu1  ;;  %v2363_v11 = vpop.f32.mrb[97].mxu0 }
 0x1a8   : > { %v2385_v8 = vpop.f32.mrb[97].mxu1  ;;  %v1611_v45 = vpop.f32.mrb[98].mxu0 }
 0x1a9   : > { %v2096_v20 = vpack.c.bf16 %v1768_v3, %v1767_v54  ;;  %v1742_v17 = vadd.f32 %v1727_v33, %v1623_v61  ;;  %v1624_v21 = vadd.f32 %v1611_v45, %v2893_v58  ;;  %v1730_v24 = vpop.f32.mrb[98].mxu1  ;;  %v2364_v27 = vpop.f32.mrb[99].mxu0 }
 0x1aa   : > { %v2386_v13 = vpop.f32.mrb[99].mxu1 }
 0x1ab   : > { %2105 = vst [vmem:[%s2907_s9 + $0x18] sm:$0xff] %v2096_v20   ;;  %v1759_v29 = vadd.f32 %v2898_v6, %v1742_v17  ;;  %v1743_v14 = vadd.f32 %v1730_v24, %v1624_v21 }
 0x1ad   : > { %v1760_v9 = vadd.f32 %v2898_v6, %v1743_v14  ;;  %v1769_v30 = vmax.f32 %v1759_v29, 0.0 }
 0x1af   : > { %v1770_v4 = vmax.f32 %v1760_v9, 0.0 }
 0x1b1   : > { %v2101_v34 = vpack.c.bf16 %v1770_v4, %v1769_v30 }
 0x1b3   : > { %2106 = vst [vmem:[%s2907_s9 + $0x20] sm:$0xff] %v2101_v34  }
 0x1b4 PF: > { %s15_s20 = sadd.s32 1, %s2470_s20   ;;  %s2944_s18 = smov %s2466_s19 }
 0x1b5   : > { %p12_p5 = scmp.ge.s32.totalorder %s15_s20, 4   ;;  %s2945_s19 = smov %s2947_s21 }
 0x1b7   :  { %14 = sbr.rel (!%p12_p5) target bundleno = 2 (0x2), region = 90 }

</bundles_post_ra>
